<compile_context>
chip_gen: v7x
topology: tpu7x:2x2x1
jax: 0.10.0
libtpu: 0.0.40
codegen_flags: <defaults>
</compile_context>

<pallas_src>
import functools

import jax
import jax.numpy as jnp
from jax.experimental import pallas as pl
from jax.experimental.pallas import tpu as pltpu

BN_EPS = 0.8          # nn.BatchNorm1d(out_feat, 0.8) -> eps=0.8
LEAKY_SLOPE = 0.2
LANE = 128


def _round_up(x, m):
    return (x + m - 1) // m * m


def _leaky_relu(x):
    return jnp.where(x > 0, x, LEAKY_SLOPE * x)


def _linear_f32(h, w_bf16, b_ref=None):
    # bf16 weights (DMA-cheap) cast at the use point; f32 accumulation.
    out = jnp.dot(h, w_bf16.astype(jnp.float32),
                  preferred_element_type=jnp.float32)
    if b_ref is not None:
        out = out + b_ref[...]
    return out


def _bn_leaky(h, g_ref, be_ref):
    # Train-mode BatchNorm1d (biased batch variance) fused to one scale/shift,
    # followed by LeakyReLU. rsqrt goes to the EUP slot.
    mean = jnp.mean(h, axis=0, keepdims=True)
    var = jnp.mean(jnp.square(h - mean), axis=0, keepdims=True)
    scale = g_ref[...] * jax.lax.rsqrt(var + BN_EPS)
    shift = be_ref[...] - mean * scale
    return _leaky_relu(h * scale + shift)


def generator_kernel(z_ref,
                     w1_ref, b1_ref,
                     w2_ref, g2_ref, be2_ref,
                     w3_hbm, g3_ref, be3_ref,
                     w4_hbm, g4_ref, be4_ref,
                     w5_hbm, b5_ref,
                     out_ref,
                     w3_buf, w4_buf, w5_buf, dma_sem):
    # Kick off DMAs of the three largest weights in consumption order; they
    # overlap the compute of all preceding blocks.
    w3_cp = pltpu.make_async_copy(w3_hbm, w3_buf, dma_sem.at[0])
    w4_cp = pltpu.make_async_copy(w4_hbm, w4_buf, dma_sem.at[1])
    w5_cp = pltpu.make_async_copy(w5_hbm, w5_buf, dma_sem.at[2])
    w3_cp.start()
    w4_cp.start()
    w5_cp.start()

    x = z_ref[...].astype(jnp.float32)

    # Block 1: Linear -> LeakyReLU (no BatchNorm, so the bias stays).
    h = _leaky_relu(_linear_f32(x, w1_ref[...], b1_ref))

    # Blocks 2-4: Linear -> BN -> LeakyReLU.
    # Linear bias omitted: cancelled exactly by BN's batch-mean subtraction.
    h = _bn_leaky(_linear_f32(h, w2_ref[...]), g2_ref, be2_ref)

    w3_cp.wait()
    h = _bn_leaky(_linear_f32(h, w3_buf[...]), g3_ref, be3_ref)

    w4_cp.wait()
    h = _bn_leaky(_linear_f32(h, w4_buf[...]), g4_ref, be4_ref)

    # Output head: Linear -> Sigmoid. Padded lanes (if any) are sliced off in
    # the wrapper; their weights/bias are zero so they are harmless.
    w5_cp.wait()
    out_ref[...] = jax.nn.sigmoid(_linear_f32(h, w5_buf[...], b5_ref))


def _full_spec(shape):
    # Whole-array block, single grid point.
    return pl.BlockSpec(shape, lambda: (0,) * len(shape))


@functools.partial(jax.jit, static_argnames=("img_shape",))
def generator_forward(z, params, img_shape):
    """params: dict of arrays (bf16 weights, f32 biases/BN params)."""
    batch = z.shape[0]
    out_dim = 1
    for d in img_shape:
        out_dim *= d
    out_dim_pad = _round_up(out_dim, LANE)

    # Pad the output head so the kernel's stores are lane-dense (mult. of 128).
    w5 = params["w5"]
    b5 = params["b5"]
    if out_dim_pad != out_dim:
        w5 = jnp.pad(w5, ((0, 0), (0, out_dim_pad - out_dim)))
        b5 = jnp.pad(b5, ((0, 0), (0, out_dim_pad - out_dim)))

    arrays = (
        z,
        params["w1"], params["b1"],
        params["w2"], params["g2"], params["be2"],
        params["w3"], params["g3"], params["be3"],
        params["w4"], params["g4"], params["be4"],
        w5, b5,
    )
    # w3 (idx 6), w4 (idx 9) and w5 (idx 12) stay in HBM and are DMA'd manually
    # inside the kernel (overlapped with compute); everything else is small and
    # goes straight to VMEM before the kernel body starts.
    hbm_indices = (6, 9, 12)
    in_specs = [
        pl.BlockSpec(memory_space=pl.ANY) if i in hbm_indices
        else _full_spec(a.shape)
        for i, a in enumerate(arrays)
    ]

    flat = pl.pallas_call(
        generator_kernel,
        out_shape=jax.ShapeDtypeStruct((batch, out_dim_pad), jnp.float32),
        grid=(),
        in_specs=in_specs,
        out_specs=_full_spec((batch, out_dim_pad)),
        scratch_shapes=[
            pltpu.VMEM(params["w3"].shape, params["w3"].dtype),
            pltpu.VMEM(params["w4"].shape, params["w4"].dtype),
            pltpu.VMEM((w5.shape[0], out_dim_pad), w5.dtype),
            pltpu.SemaphoreType.DMA((3,)),
        ],
        # No vmem_limit override: the real footprint is ~2-3 MiB and fits the
        # default scoped VMEM limit on v5e/v6e/v7x.
    )(*arrays)

    return flat[:, :out_dim].reshape((batch,) + tuple(img_shape))


def init_generator_params(key, latent_dim, img_shape):
    """Deterministic synthetic parameter init (shapes match the PyTorch module).

    Linear weights are stored pre-transposed as (in, out) and in bfloat16;
    biases and BatchNorm affine params stay float32.
    """
    out_dim = 1
    for d in img_shape:
        out_dim *= d
    dims = [latent_dim, 128, 256, 512, 1024, out_dim]

    params = {}
    keys = jax.random.split(key, 10)
    ki = 0

    def lin(i_feat, o_feat):
        nonlocal ki
        scale = 1.0 / jnp.sqrt(jnp.float32(i_feat))
        w = jax.random.uniform(keys[ki], (i_feat, o_feat), jnp.float32,
                               minval=-scale, maxval=scale).astype(jnp.bfloat16)
        ki += 1
        b = jax.random.uniform(keys[ki], (1, o_feat), jnp.float32,
                               minval=-scale, maxval=scale)
        ki += 1
        return w, b

    params["w1"], params["b1"] = lin(dims[0], dims[1])
    params["w2"], params["b2"] = lin(dims[1], dims[2])   # b2/b3/b4 used only by
    params["w3"], params["b3"] = lin(dims[2], dims[3])   # the pure-JAX reference;
    params["w4"], params["b4"] = lin(dims[3], dims[4])   # BN cancels them.
    params["w5"], params["b5"] = lin(dims[4], dims[5])

    # BatchNorm affine params (PyTorch default: gamma=1, beta=0).
    for name, feat in (("2", dims[2]), ("3", dims[3]), ("4", dims[4])):
        params["g" + name] = jnp.ones((1, feat), jnp.float32)
        params["be" + name] = jnp.zeros((1, feat), jnp.float32)

    return params


def _reference_forward(z, params):
    """Pure-JAX reference with full PyTorch semantics (biases included)."""
    def w(name):
        return params[name].astype(jnp.float32)

    h = z @ w("w1") + params["b1"]
    h = jnp.where(h > 0, h, LEAKY_SLOPE * h)
    for i in ("2", "3", "4"):
        h = h @ w("w" + i) + params["b" + i]
        mean = jnp.mean(h, axis=0, keepdims=True)
        var = jnp.mean((h - mean) ** 2, axis=0, keepdims=True)
        h = (h - mean) / jnp.sqrt(var + BN_EPS) * params["g" + i] + params["be" + i]
        h = jnp.where(h > 0, h, LEAKY_SLOPE * h)
    return jax.nn.sigmoid(h @ w("w5") + params["b5"])


if __name__ == "__main__":
    latent_dim = 32
    img_shape = (1, 16, 16)   # (C, H, W) -> output is NCHW (B, 1, 16, 16)
    batch = 8

    key = jax.random.PRNGKey(0)
    k_param, k_z = jax.random.split(key)
    params = init_generator_params(k_param, latent_dim, img_shape)
    z = jax.random.normal(k_z, (batch, latent_dim), jnp.float32)

    img = generator_forward(z, params, img_shape)
    img = jax.block_until_ready(img)

    assert img.shape == (batch,) + img_shape, img.shape

    ref = _reference_forward(z, params).reshape((batch,) + img_shape)
    ref = jax.block_until_ready(ref)
    max_err = float(jnp.max(jnp.abs(img - ref)))
    assert max_err < 5e-4, f"mismatch vs reference: {max_err}"

    print("KERNEL_OK")
</pallas_src>

<mosaic_0001>
module attributes {stable_mosaic.version = 11 : i64} {
  func.func @generator_kernel(%arg0: memref<8x32xf32, #tpu.memory_space<vmem>>, %arg1: memref<32x128xbf16, #tpu.memory_space<vmem>>, %arg2: memref<1x128xf32, #tpu.memory_space<vmem>>, %arg3: memref<128x256xbf16, #tpu.memory_space<vmem>>, %arg4: memref<1x256xf32, #tpu.memory_space<vmem>>, %arg5: memref<1x256xf32, #tpu.memory_space<vmem>>, %arg6: memref<256x512xbf16, #tpu.memory_space<any>>, %arg7: memref<1x512xf32, #tpu.memory_space<vmem>>, %arg8: memref<1x512xf32, #tpu.memory_space<vmem>>, %arg9: memref<512x1024xbf16, #tpu.memory_space<any>>, %arg10: memref<1x1024xf32, #tpu.memory_space<vmem>>, %arg11: memref<1x1024xf32, #tpu.memory_space<vmem>>, %arg12: memref<1024x256xbf16, #tpu.memory_space<any>>, %arg13: memref<1x256xf32, #tpu.memory_space<vmem>>, %arg14: memref<8x256xf32, #tpu.memory_space<vmem>>, %arg15: memref<256x512xbf16, #tpu.memory_space<vmem>>, %arg16: memref<512x1024xbf16, #tpu.memory_space<vmem>>, %arg17: memref<1024x256xbf16, #tpu.memory_space<vmem>>, %arg18: memref<3x!tpu.dma_semaphore, #tpu.memory_space<semaphore_mem>>) attributes {dimension_semantics = [], scalar_prefetch = 0 : i64, scratch_operands = 4 : i64, tpu.core_type = #tpu.core_type<tc>} {
    %c0_i32 = arith.constant 0 : i32
    %0 = tpu.memref_slice %arg18[%c0_i32] : memref<3x!tpu.dma_semaphore, #tpu.memory_space<semaphore_mem>> -> memref<1x!tpu.dma_semaphore, #tpu.memory_space<semaphore_mem>>
    %1 = tpu.memref_squeeze %0 : memref<1x!tpu.dma_semaphore, #tpu.memory_space<semaphore_mem>> -> memref<!tpu.dma_semaphore, #tpu.memory_space<semaphore_mem>>
    tpu.enqueue_dma source(%arg6 : memref<256x512xbf16, #tpu.memory_space<any>>) target(%arg15 : memref<256x512xbf16, #tpu.memory_space<vmem>>) target_semaphore(%1 : memref<!tpu.dma_semaphore, #tpu.memory_space<semaphore_mem>>)
    %c1_i32 = arith.constant 1 : i32
    %2 = tpu.memref_slice %arg18[%c1_i32] : memref<3x!tpu.dma_semaphore, #tpu.memory_space<semaphore_mem>> -> memref<1x!tpu.dma_semaphore, #tpu.memory_space<semaphore_mem>>
    %3 = tpu.memref_squeeze %2 : memref<1x!tpu.dma_semaphore, #tpu.memory_space<semaphore_mem>> -> memref<!tpu.dma_semaphore, #tpu.memory_space<semaphore_mem>>
    tpu.enqueue_dma source(%arg9 : memref<512x1024xbf16, #tpu.memory_space<any>>) target(%arg16 : memref<512x1024xbf16, #tpu.memory_space<vmem>>) target_semaphore(%3 : memref<!tpu.dma_semaphore, #tpu.memory_space<semaphore_mem>>)
    %c2_i32 = arith.constant 2 : i32
    %4 = tpu.memref_slice %arg18[%c2_i32] : memref<3x!tpu.dma_semaphore, #tpu.memory_space<semaphore_mem>> -> memref<1x!tpu.dma_semaphore, #tpu.memory_space<semaphore_mem>>
    %5 = tpu.memref_squeeze %4 : memref<1x!tpu.dma_semaphore, #tpu.memory_space<semaphore_mem>> -> memref<!tpu.dma_semaphore, #tpu.memory_space<semaphore_mem>>
    tpu.enqueue_dma source(%arg12 : memref<1024x256xbf16, #tpu.memory_space<any>>) target(%arg17 : memref<1024x256xbf16, #tpu.memory_space<vmem>>) target_semaphore(%5 : memref<!tpu.dma_semaphore, #tpu.memory_space<semaphore_mem>>)
    %c0 = arith.constant 0 : index
    %c0_0 = arith.constant 0 : index
    %6 = vector.load %arg0[%c0, %c0_0] : memref<8x32xf32, #tpu.memory_space<vmem>>, vector<8x32xf32>
    %c0_1 = arith.constant 0 : index
    %c0_2 = arith.constant 0 : index
    %7 = vector.load %arg1[%c0_1, %c0_2] : memref<32x128xbf16, #tpu.memory_space<vmem>>, vector<32x128xbf16>
    %8 = arith.extf %7 : vector<32x128xbf16> to vector<32x128xf32>
    %cst = arith.constant dense<0.000000e+00> : vector<8x128xf32>
    %9 = tpu.matmul %6, %8, %cst {dimension_numbers = #tpu.dot_dimension_numbers<[1], [0], [0], [1], [0, 0, 1, 1], [], []>} : vector<8x32xf32>, vector<32x128xf32>, vector<8x128xf32> -> vector<8x128xf32>
    %c0_3 = arith.constant 0 : index
    %c0_4 = arith.constant 0 : index
    %10 = vector.load %arg2[%c0_3, %c0_4] : memref<1x128xf32, #tpu.memory_space<vmem>>, vector<1x128xf32>
    %11 = vector.broadcast %10 : vector<1x128xf32> to vector<8x128xf32>
    %12 = arith.addf %9, %11 : vector<8x128xf32>
    %cst_5 = arith.constant 0.000000e+00 : f32
    %13 = vector.broadcast %cst_5 : f32 to vector<8x128xf32>
    %14 = arith.cmpf ogt, %12, %13 : vector<8x128xf32>
    %cst_6 = arith.constant 2.000000e-01 : f32
    %15 = vector.broadcast %cst_6 : f32 to vector<8x128xf32>
    %16 = arith.mulf %15, %12 : vector<8x128xf32>
    %17 = arith.select %14, %12, %16 : vector<8x128xi1>, vector<8x128xf32>
    %c0_7 = arith.constant 0 : index
    %c0_8 = arith.constant 0 : index
    %18 = vector.load %arg3[%c0_7, %c0_8] : memref<128x256xbf16, #tpu.memory_space<vmem>>, vector<128x256xbf16>
    %19 = arith.extf %18 : vector<128x256xbf16> to vector<128x256xf32>
    %cst_9 = arith.constant dense<0.000000e+00> : vector<8x256xf32>
    %20 = tpu.matmul %17, %19, %cst_9 {dimension_numbers = #tpu.dot_dimension_numbers<[1], [0], [0], [1], [0, 0, 1, 1], [], []>} : vector<8x128xf32>, vector<128x256xf32>, vector<8x256xf32> -> vector<8x256xf32>
    %cst_10 = arith.constant dense<0.000000e+00> : vector<256xf32>
    %21 = vector.multi_reduction <add>, %20, %cst_10 [0] : vector<8x256xf32> to vector<256xf32>
    %22 = vector.shape_cast %21 : vector<256xf32> to vector<1x256xf32>
    %cst_11 = arith.constant 8.000000e+00 : f32
    %23 = vector.broadcast %cst_11 : f32 to vector<1x256xf32>
    %24 = arith.divf %22, %23 : vector<1x256xf32>
    %25 = vector.broadcast %24 : vector<1x256xf32> to vector<8x256xf32>
    %26 = arith.subf %20, %25 : vector<8x256xf32>
    %27 = arith.mulf %26, %26 : vector<8x256xf32>
    %cst_12 = arith.constant dense<0.000000e+00> : vector<256xf32>
    %28 = vector.multi_reduction <add>, %27, %cst_12 [0] : vector<8x256xf32> to vector<256xf32>
    %29 = vector.shape_cast %28 : vector<256xf32> to vector<1x256xf32>
    %cst_13 = arith.constant 8.000000e+00 : f32
    %30 = vector.broadcast %cst_13 : f32 to vector<1x256xf32>
    %31 = arith.divf %29, %30 : vector<1x256xf32>
    %c0_14 = arith.constant 0 : index
    %c0_15 = arith.constant 0 : index
    %32 = vector.load %arg4[%c0_14, %c0_15] : memref<1x256xf32, #tpu.memory_space<vmem>>, vector<1x256xf32>
    %cst_16 = arith.constant 8.000000e-01 : f32
    %33 = vector.broadcast %cst_16 : f32 to vector<1x256xf32>
    %34 = arith.addf %31, %33 : vector<1x256xf32>
    %35 = math.rsqrt %34 : vector<1x256xf32>
    %36 = arith.mulf %32, %35 : vector<1x256xf32>
    %c0_17 = arith.constant 0 : index
    %c0_18 = arith.constant 0 : index
    %37 = vector.load %arg5[%c0_17, %c0_18] : memref<1x256xf32, #tpu.memory_space<vmem>>, vector<1x256xf32>
    %38 = arith.mulf %24, %36 : vector<1x256xf32>
    %39 = arith.subf %37, %38 : vector<1x256xf32>
    %40 = vector.broadcast %36 : vector<1x256xf32> to vector<8x256xf32>
    %41 = arith.mulf %20, %40 : vector<8x256xf32>
    %42 = vector.broadcast %39 : vector<1x256xf32> to vector<8x256xf32>
    %43 = arith.addf %41, %42 : vector<8x256xf32>
    %cst_19 = arith.constant 0.000000e+00 : f32
    %44 = vector.broadcast %cst_19 : f32 to vector<8x256xf32>
    %45 = arith.cmpf ogt, %43, %44 : vector<8x256xf32>
    %cst_20 = arith.constant 2.000000e-01 : f32
    %46 = vector.broadcast %cst_20 : f32 to vector<8x256xf32>
    %47 = arith.mulf %46, %43 : vector<8x256xf32>
    %48 = arith.select %45, %43, %47 : vector<8x256xi1>, vector<8x256xf32>
    %c0_i32_21 = arith.constant 0 : i32
    %49 = tpu.memref_slice %arg18[%c0_i32_21] : memref<3x!tpu.dma_semaphore, #tpu.memory_space<semaphore_mem>> -> memref<1x!tpu.dma_semaphore, #tpu.memory_space<semaphore_mem>>
    %50 = tpu.memref_squeeze %49 : memref<1x!tpu.dma_semaphore, #tpu.memory_space<semaphore_mem>> -> memref<!tpu.dma_semaphore, #tpu.memory_space<semaphore_mem>>
    tpu.wait_dma2 semaphore(%50 : memref<!tpu.dma_semaphore, #tpu.memory_space<semaphore_mem>>) src(%arg6 : memref<256x512xbf16, #tpu.memory_space<any>>) dst(%arg15 : memref<256x512xbf16, #tpu.memory_space<vmem>>)
    %c0_22 = arith.constant 0 : index
    %c0_23 = arith.constant 0 : index
    %51 = vector.load %arg15[%c0_22, %c0_23] : memref<256x512xbf16, #tpu.memory_space<vmem>>, vector<256x512xbf16>
    %52 = arith.extf %51 : vector<256x512xbf16> to vector<256x512xf32>
    %cst_24 = arith.constant dense<0.000000e+00> : vector<8x512xf32>
    %53 = tpu.matmul %48, %52, %cst_24 {dimension_numbers = #tpu.dot_dimension_numbers<[1], [0], [0], [1], [0, 0, 1, 1], [], []>} : vector<8x256xf32>, vector<256x512xf32>, vector<8x512xf32> -> vector<8x512xf32>
    %cst_25 = arith.constant dense<0.000000e+00> : vector<512xf32>
    %54 = vector.multi_reduction <add>, %53, %cst_25 [0] : vector<8x512xf32> to vector<512xf32>
    %55 = vector.shape_cast %54 : vector<512xf32> to vector<1x512xf32>
    %cst_26 = arith.constant 8.000000e+00 : f32
    %56 = vector.broadcast %cst_26 : f32 to vector<1x512xf32>
    %57 = arith.divf %55, %56 : vector<1x512xf32>
    %58 = vector.broadcast %57 : vector<1x512xf32> to vector<8x512xf32>
    %59 = arith.subf %53, %58 : vector<8x512xf32>
    %60 = arith.mulf %59, %59 : vector<8x512xf32>
    %cst_27 = arith.constant dense<0.000000e+00> : vector<512xf32>
    %61 = vector.multi_reduction <add>, %60, %cst_27 [0] : vector<8x512xf32> to vector<512xf32>
    %62 = vector.shape_cast %61 : vector<512xf32> to vector<1x512xf32>
    %cst_28 = arith.constant 8.000000e+00 : f32
    %63 = vector.broadcast %cst_28 : f32 to vector<1x512xf32>
    %64 = arith.divf %62, %63 : vector<1x512xf32>
    %c0_29 = arith.constant 0 : index
    %c0_30 = arith.constant 0 : index
    %65 = vector.load %arg7[%c0_29, %c0_30] : memref<1x512xf32, #tpu.memory_space<vmem>>, vector<1x512xf32>
    %cst_31 = arith.constant 8.000000e-01 : f32
    %66 = vector.broadcast %cst_31 : f32 to vector<1x512xf32>
    %67 = arith.addf %64, %66 : vector<1x512xf32>
    %68 = math.rsqrt %67 : vector<1x512xf32>
    %69 = arith.mulf %65, %68 : vector<1x512xf32>
    %c0_32 = arith.constant 0 : index
    %c0_33 = arith.constant 0 : index
    %70 = vector.load %arg8[%c0_32, %c0_33] : memref<1x512xf32, #tpu.memory_space<vmem>>, vector<1x512xf32>
    %71 = arith.mulf %57, %69 : vector<1x512xf32>
    %72 = arith.subf %70, %71 : vector<1x512xf32>
    %73 = vector.broadcast %69 : vector<1x512xf32> to vector<8x512xf32>
    %74 = arith.mulf %53, %73 : vector<8x512xf32>
    %75 = vector.broadcast %72 : vector<1x512xf32> to vector<8x512xf32>
    %76 = arith.addf %74, %75 : vector<8x512xf32>
    %cst_34 = arith.constant 0.000000e+00 : f32
    %77 = vector.broadcast %cst_34 : f32 to vector<8x512xf32>
    %78 = arith.cmpf ogt, %76, %77 : vector<8x512xf32>
    %cst_35 = arith.constant 2.000000e-01 : f32
    %79 = vector.broadcast %cst_35 : f32 to vector<8x512xf32>
    %80 = arith.mulf %79, %76 : vector<8x512xf32>
    %81 = arith.select %78, %76, %80 : vector<8x512xi1>, vector<8x512xf32>
    %c1_i32_36 = arith.constant 1 : i32
    %82 = tpu.memref_slice %arg18[%c1_i32_36] : memref<3x!tpu.dma_semaphore, #tpu.memory_space<semaphore_mem>> -> memref<1x!tpu.dma_semaphore, #tpu.memory_space<semaphore_mem>>
    %83 = tpu.memref_squeeze %82 : memref<1x!tpu.dma_semaphore, #tpu.memory_space<semaphore_mem>> -> memref<!tpu.dma_semaphore, #tpu.memory_space<semaphore_mem>>
    tpu.wait_dma2 semaphore(%83 : memref<!tpu.dma_semaphore, #tpu.memory_space<semaphore_mem>>) src(%arg9 : memref<512x1024xbf16, #tpu.memory_space<any>>) dst(%arg16 : memref<512x1024xbf16, #tpu.memory_space<vmem>>)
    %c0_37 = arith.constant 0 : index
    %c0_38 = arith.constant 0 : index
    %84 = vector.load %arg16[%c0_37, %c0_38] : memref<512x1024xbf16, #tpu.memory_space<vmem>>, vector<512x1024xbf16>
    %85 = arith.extf %84 : vector<512x1024xbf16> to vector<512x1024xf32>
    %cst_39 = arith.constant dense<0.000000e+00> : vector<8x1024xf32>
    %86 = tpu.matmul %81, %85, %cst_39 {dimension_numbers = #tpu.dot_dimension_numbers<[1], [0], [0], [1], [0, 0, 1, 1], [], []>} : vector<8x512xf32>, vector<512x1024xf32>, vector<8x1024xf32> -> vector<8x1024xf32>
    %cst_40 = arith.constant dense<0.000000e+00> : vector<1024xf32>
    %87 = vector.multi_reduction <add>, %86, %cst_40 [0] : vector<8x1024xf32> to vector<1024xf32>
    %88 = vector.shape_cast %87 : vector<1024xf32> to vector<1x1024xf32>
    %cst_41 = arith.constant 8.000000e+00 : f32
    %89 = vector.broadcast %cst_41 : f32 to vector<1x1024xf32>
    %90 = arith.divf %88, %89 : vector<1x1024xf32>
    %91 = vector.broadcast %90 : vector<1x1024xf32> to vector<8x1024xf32>
    %92 = arith.subf %86, %91 : vector<8x1024xf32>
    %93 = arith.mulf %92, %92 : vector<8x1024xf32>
    %cst_42 = arith.constant dense<0.000000e+00> : vector<1024xf32>
    %94 = vector.multi_reduction <add>, %93, %cst_42 [0] : vector<8x1024xf32> to vector<1024xf32>
    %95 = vector.shape_cast %94 : vector<1024xf32> to vector<1x1024xf32>
    %cst_43 = arith.constant 8.000000e+00 : f32
    %96 = vector.broadcast %cst_43 : f32 to vector<1x1024xf32>
    %97 = arith.divf %95, %96 : vector<1x1024xf32>
    %c0_44 = arith.constant 0 : index
    %c0_45 = arith.constant 0 : index
    %98 = vector.load %arg10[%c0_44, %c0_45] : memref<1x1024xf32, #tpu.memory_space<vmem>>, vector<1x1024xf32>
    %cst_46 = arith.constant 8.000000e-01 : f32
    %99 = vector.broadcast %cst_46 : f32 to vector<1x1024xf32>
    %100 = arith.addf %97, %99 : vector<1x1024xf32>
    %101 = math.rsqrt %100 : vector<1x1024xf32>
    %102 = arith.mulf %98, %101 : vector<1x1024xf32>
    %c0_47 = arith.constant 0 : index
    %c0_48 = arith.constant 0 : index
    %103 = vector.load %arg11[%c0_47, %c0_48] : memref<1x1024xf32, #tpu.memory_space<vmem>>, vector<1x1024xf32>
    %104 = arith.mulf %90, %102 : vector<1x1024xf32>
    %105 = arith.subf %103, %104 : vector<1x1024xf32>
    %106 = vector.broadcast %102 : vector<1x1024xf32> to vector<8x1024xf32>
    %107 = arith.mulf %86, %106 : vector<8x1024xf32>
    %108 = vector.broadcast %105 : vector<1x1024xf32> to vector<8x1024xf32>
    %109 = arith.addf %107, %108 : vector<8x1024xf32>
    %cst_49 = arith.constant 0.000000e+00 : f32
    %110 = vector.broadcast %cst_49 : f32 to vector<8x1024xf32>
    %111 = arith.cmpf ogt, %109, %110 : vector<8x1024xf32>
    %cst_50 = arith.constant 2.000000e-01 : f32
    %112 = vector.broadcast %cst_50 : f32 to vector<8x1024xf32>
    %113 = arith.mulf %112, %109 : vector<8x1024xf32>
    %114 = arith.select %111, %109, %113 : vector<8x1024xi1>, vector<8x1024xf32>
    %c2_i32_51 = arith.constant 2 : i32
    %115 = tpu.memref_slice %arg18[%c2_i32_51] : memref<3x!tpu.dma_semaphore, #tpu.memory_space<semaphore_mem>> -> memref<1x!tpu.dma_semaphore, #tpu.memory_space<semaphore_mem>>
    %116 = tpu.memref_squeeze %115 : memref<1x!tpu.dma_semaphore, #tpu.memory_space<semaphore_mem>> -> memref<!tpu.dma_semaphore, #tpu.memory_space<semaphore_mem>>
    tpu.wait_dma2 semaphore(%116 : memref<!tpu.dma_semaphore, #tpu.memory_space<semaphore_mem>>) src(%arg12 : memref<1024x256xbf16, #tpu.memory_space<any>>) dst(%arg17 : memref<1024x256xbf16, #tpu.memory_space<vmem>>)
    %c0_52 = arith.constant 0 : index
    %c0_53 = arith.constant 0 : index
    %117 = vector.load %arg17[%c0_52, %c0_53] : memref<1024x256xbf16, #tpu.memory_space<vmem>>, vector<1024x256xbf16>
    %118 = arith.extf %117 : vector<1024x256xbf16> to vector<1024x256xf32>
    %cst_54 = arith.constant dense<0.000000e+00> : vector<8x256xf32>
    %119 = tpu.matmul %114, %118, %cst_54 {dimension_numbers = #tpu.dot_dimension_numbers<[1], [0], [0], [1], [0, 0, 1, 1], [], []>} : vector<8x1024xf32>, vector<1024x256xf32>, vector<8x256xf32> -> vector<8x256xf32>
    %c0_55 = arith.constant 0 : index
    %c0_56 = arith.constant 0 : index
    %120 = vector.load %arg13[%c0_55, %c0_56] : memref<1x256xf32, #tpu.memory_space<vmem>>, vector<1x256xf32>
    %121 = vector.broadcast %120 : vector<1x256xf32> to vector<8x256xf32>
    %122 = arith.addf %119, %121 : vector<8x256xf32>
    %123 = arith.negf %122 : vector<8x256xf32>
    %124 = math.exp %123 : vector<8x256xf32>
    %cst_57 = arith.constant 1.000000e+00 : f32
    %125 = vector.broadcast %cst_57 : f32 to vector<8x256xf32>
    %126 = arith.addf %125, %124 : vector<8x256xf32>
    %127 = arith.divf %125, %126 : vector<8x256xf32>
    %c0_58 = arith.constant 0 : index
    %c0_59 = arith.constant 0 : index
    %128 = vector.load %arg14[%c0_58, %c0_59] : memref<8x256xf32, #tpu.memory_space<vmem>>, vector<8x256xf32>
    tpu.vector_store %arg14[%c0_58, %c0_59], %127 {strides = array<i32>} : memref<8x256xf32, #tpu.memory_space<vmem>>, vector<8x256xf32>,
    return
  }
}

</mosaic_0001>

<bundles_post_ra>
// kernel: generator_forward.1
= control target key start
LH: loop header
LB: loop body
LE: loop exit
PB: predicated region body
PF: predicated region fallthrough
CT: control target
= control target key end

     0   :  { %19 = vsyncpa [#allocation7], 0  ;;  %s5301_s0 = inlined_call_operand.hbm [shape: f32[8,32], index: 0, kind: input, shape index: {}]   ;;  %s5302_s1 = inlined_call_operand.vmem [shape: bf16[32,128], index: 1, kind: input, shape index: {}]   ;;  %s5303_s2 = inlined_call_operand.hbm [shape: f32[1,128], index: 2, kind: input, shape index: {}]   ;;  %s5304_s3 = inlined_call_operand.hbm [shape: bf16[128,256], index: 3, kind: input, shape index: {}]   ;;  %s5305_s4 = inlined_call_operand.vmem [shape: f32[1,256], index: 4, kind: input, shape index: {}]   ;;  %s5306_s5 = inlined_call_operand.hbm [shape: f32[1,256], index: 5, kind: input, shape index: {}]   ;;  %s5307_s6 = inlined_call_operand.hbm [shape: bf16[256,512], index: 6, kind: input, shape index: {}]   ;;  %s5308_s7 = inlined_call_operand.vmem [shape: f32[1,512], index: 7, kind: input, shape index: {}]   ;;  %s5309_s8 = inlined_call_operand.hbm [shape: f32[1,512], index: 8, kind: input, shape index: {}]   ;;  %s5310_s9 = inlined_call_operand.hbm [shape: bf16[512,1024], index: 9, kind: input, shape index: {}]   ;;  %s5311_s10 = inlined_call_operand.vmem [shape: f32[1,1024], index: 10, kind: input, shape index: {}]   ;;  %s5312_s11 = inlined_call_operand.hbm [shape: f32[1,1024], index: 11, kind: input, shape index: {}]   ;;  %s5313_s12 = inlined_call_operand.hbm [shape: bf16[1024,256], index: 12, kind: input, shape index: {}]   ;;  %s5314_s13 = inlined_call_operand.hbm [shape: f32[1,256], index: 13, kind: input, shape index: {}]   ;;  %s5315_s14 = inlined_call_operand.vmem [shape: f32[8,256], index: 14, kind: output, shape index: {}]  }
   0x1   :  { %20 = vsyncpa [#allocation9], 0 }
   0x2   :  { %21 = vsyncpa [#allocation12], 0 }
   0x3   :  { %22 = vsyncpa [#allocation15], 0  ;;  %s4810_s29 = smov [#allocation8]   ;;  %s4811_s15 = smov [#allocation11]  }
   0x4   :  { %s41_s30 = sshll.u32 %s4810_s29, 4  ;;  %s65_s16 = sshll.u32 %s4811_s15, 4  ;;  %s42_s30 = int_to_ptr.vmem [resolvable:$true] %s41_s30  ;;  %s66_s16 = int_to_ptr.vmem [resolvable:$true] %s65_s16 }
   0x5   :  { %s4642_s19 = scalar_lea.hbm %s5303_s2, 16 }
   0x6   :  { %p4643_p0 = scmp.ne.s32.totalorder %s5303_s2, %s4642_s19  ;;  %p4646_p1 = scmp.lt.u32.totalorder %s4642_s19, %s5303_s2 }
   0x8   :  { %p4648_p2 = pnand %p4646_p1, %p4643_p0 }
   0xa   :  { %4651 = shalt.err (!%p4648_p2)
}
   0xb   :  { %s4652_s24 = scalar_lea.vmem %s42_s30, 16  ;;  %s4656_s25 = scalar_lea.vmem %s42_s30, 32 }
   0xc   :  { %p4653_p3 = scmp.ne.s32.totalorder %s42_s30, %s4652_s24  ;;  %p4657_p4 = scmp.lt.s32.totalorder %s42_s30, %s42_s30 }
   0xd   :  { %p4658_p5 = scmp.lt.s32.totalorder %s4656_s25, %s4652_s24 }
   0xf   :  { %p4659_p6 = por %p4658_p5, %p4657_p4 }
  0x11   :  { %p4660_p7 = pnand %p4659_p6, %p4653_p3 }
  0x13   :  { %4663 = shalt.err (!%p4660_p7)
}
  0x14   :  { %44 = dma.hbm_to_vmem [thread:$0]  %s5303_s2, 16, %s42_s30, [#allocation9]  }
  0x15   :  { %s4664_s15 = scalar_lea.hbm %s5306_s5, 32 }
  0x16   :  { %p4665_p8 = scmp.ne.s32.totalorder %s5306_s5, %s4664_s15  ;;  %p4668_p9 = scmp.lt.u32.totalorder %s4664_s15, %s5306_s5 }
  0x18   :  { %p4670_p10 = pnand %p4668_p9, %p4665_p8 }
  0x1a   :  { %4673 = shalt.err (!%p4670_p10)
}
  0x1b   :  { %s4674_s21 = scalar_lea.vmem %s66_s16, 32  ;;  %p4679_p12 = scmp.lt.s32.totalorder %s66_s16, %s66_s16 }
  0x1c   :  { %p4675_p11 = scmp.ne.s32.totalorder %s66_s16, %s4674_s21  ;;  %p4680_p13 = scmp.lt.s32.totalorder %s4674_s21, %s4674_s21 }
  0x1e   :  { %p4681_p0 = por %p4680_p13, %p4679_p12 }
  0x20   :  { %p4682_p1 = pnand %p4681_p0, %p4675_p11 }
  0x22   :  { %4685 = shalt.err (!%p4682_p1)
}
  0x23   :  { %68 = dma.hbm_to_vmem [thread:$0]  %s5306_s5, 32, %s66_s16, [#allocation12]  }
  0x24   :  { %s4812_s22 = smov [#allocation14]   ;;  %s4813_s24 = smov [#allocation6]  }
  0x25   :  { %s89_s23 = sshll.u32 %s4812_s22, 4  ;;  %s29_s25 = sshll.u32 %s4813_s24, 4  ;;  %s90_s23 = int_to_ptr.vmem [resolvable:$true] %s89_s23  ;;  %s30_s25 = int_to_ptr.vmem [resolvable:$true] %s29_s25 }
  0x26   :  { %s4686_s28 = scalar_lea.hbm %s5312_s11, 128 }
  0x27   :  { %p4687_p2 = scmp.ne.s32.totalorder %s5312_s11, %s4686_s28  ;;  %p4690_p3 = scmp.lt.u32.totalorder %s4686_s28, %s5312_s11 }
  0x29   :  { %p4692_p4 = pnand %p4690_p3, %p4687_p2 }
  0x2b   :  { %4695 = shalt.err (!%p4692_p4)
}
  0x2c   :  { %s4696_s5 = scalar_lea.vmem %s90_s23, 128  ;;  %p4701_p6 = scmp.lt.s32.totalorder %s90_s23, %s90_s23 }
  0x2d   :  { %p4697_p5 = scmp.ne.s32.totalorder %s90_s23, %s4696_s5  ;;  %p4702_p7 = scmp.lt.s32.totalorder %s4696_s5, %s4696_s5 }
  0x2f   :  { %p4703_p8 = por %p4702_p7, %p4701_p6 }
  0x31   :  { %p4704_p9 = pnand %p4703_p8, %p4697_p5 }
  0x33   :  { %4707 = shalt.err (!%p4704_p9)
}
  0x34   :  { %92 = dma.hbm_to_vmem [thread:$0]  %s5312_s11, 128, %s90_s23, [#allocation15]  }
  0x35   :  { %s4708_s2 = scalar_lea.hbm %s5301_s0, 128 }
  0x36   :  { %p4709_p10 = scmp.ne.s32.totalorder %s5301_s0, %s4708_s2  ;;  %p4712_p11 = scmp.lt.u32.totalorder %s4708_s2, %s5301_s0 }
  0x38   :  { %p4714_p12 = pnand %p4712_p11, %p4709_p10 }
  0x3a   :  { %4717 = shalt.err (!%p4714_p12)
}
  0x3b   :  { %s4718_s27 = scalar_lea.vmem %s30_s25, 128  ;;  %p4723_p0 = scmp.lt.s32.totalorder %s30_s25, %s30_s25 }
  0x3c   :  { %p4719_p13 = scmp.ne.s32.totalorder %s30_s25, %s4718_s27  ;;  %p4724_p1 = scmp.lt.s32.totalorder %s4718_s27, %s4718_s27 }
  0x3e   :  { %p4725_p2 = por %p4724_p1, %p4723_p0 }
  0x40   :  { %p4726_p3 = pnand %p4725_p2, %p4719_p13 }
  0x42   :  { %4729 = shalt.err (!%p4726_p3)
}
  0x43   :  { %32 = dma.hbm_to_vmem [thread:$0]  %s5301_s0, 128, %s30_s25, [#allocation7]  }
  0x44   :  { %s4814_s28 = smov [#allocation10]   ;;  %s4730_s18 = scalar_lea.hbm %s5304_s3, 2048 }
  0x45   :  { %s50_s29 = sshll.u32 %s4814_s28, 4  ;;  %p4731_p4 = scmp.ne.s32.totalorder %s5304_s3, %s4730_s18  ;;  %s51_s29 = int_to_ptr.vmem [resolvable:$true] %s50_s29 }
  0x46   :  { %p4734_p5 = scmp.lt.u32.totalorder %s4730_s18, %s5304_s3 }
  0x48   :  { %p4736_p6 = pnand %p4734_p5, %p4731_p4 }
  0x4a   :  { %4739 = shalt.err (!%p4736_p6)
}
  0x4b   :  { %s4740_s21 = scalar_lea.vmem %s51_s29, 2048  ;;  %p4745_p8 = scmp.lt.s32.totalorder %s51_s29, %s51_s29 }
  0x4c   :  { %p4741_p7 = scmp.ne.s32.totalorder %s51_s29, %s4740_s21  ;;  %p4746_p9 = scmp.lt.s32.totalorder %s4740_s21, %s4740_s21 }
  0x4e   :  { %p4747_p10 = por %p4746_p9, %p4745_p8 }
  0x50   :  { %p4748_p11 = pnand %p4747_p10, %p4741_p7 }
  0x52   :  { %4751 = shalt.err (!%p4748_p11)
}
  0x53   :  { %s4815_s0 = smov 128   ;;  %s4816_s25 = smov 8  }
  0x54   :  { %56 = dma.hbm_to_vmem [thread:$0]  %s5304_s3, 2048, %s51_s29, [#allocation9], %s4815_s0, %s4815_s0, %s4816_s25  }
  0x55   :  { %s4817_s22 = smov [#allocation13]   ;;  %s4818_s26 = smov [#allocation16]  }
  0x56   :  { %s77_s24 = sshll.u32 %s4817_s22, 4  ;;  %s99_s27 = sshll.u32 %s4818_s26, 4  ;;  %s78_s24 = int_to_ptr.vmem [resolvable:$true] %s77_s24  ;;  %s100_s27 = int_to_ptr.vmem [resolvable:$true] %s99_s27 }
  0x57   :  { %s4752_s28 = scalar_lea.hbm %s5309_s8, 64 }
  0x58   :  { %p4753_p12 = scmp.ne.s32.totalorder %s5309_s8, %s4752_s28  ;;  %p4756_p13 = scmp.lt.u32.totalorder %s4752_s28, %s5309_s8 }
  0x5a   :  { %p4758_p0 = pnand %p4756_p13, %p4753_p12 }
  0x5c   :  { %4761 = shalt.err (!%p4758_p0)
}
  0x5d   :  { %s4762_s3 = scalar_lea.vmem %s78_s24, 64  ;;  %p4767_p2 = scmp.lt.s32.totalorder %s78_s24, %s78_s24 }
  0x5e   :  { %p4763_p1 = scmp.ne.s32.totalorder %s78_s24, %s4762_s3  ;;  %p4768_p3 = scmp.lt.s32.totalorder %s4762_s3, %s4762_s3 }
  0x60   :  { %p4769_p4 = por %p4768_p3, %p4767_p2 }
  0x62   :  { %p4770_p5 = pnand %p4769_p4, %p4763_p1 }
  0x64   :  { %4773 = shalt.err (!%p4770_p5)
}
  0x65   :  { %80 = dma.hbm_to_vmem [thread:$0]  %s5309_s8, 64, %s78_s24, [#allocation12]  }
  0x66   :  { %s4774_s21 = scalar_lea.hbm %s5314_s13, 32 }
  0x67   :  { %p4775_p6 = scmp.ne.s32.totalorder %s5314_s13, %s4774_s21  ;;  %p4778_p7 = scmp.lt.u32.totalorder %s4774_s21, %s5314_s13 }
  0x69   :  { %p4780_p8 = pnand %p4778_p7, %p4775_p6 }
  0x6b   :  { %4783 = shalt.err (!%p4780_p8)
}
  0x6c   :  { %s4784_s11 = scalar_lea.vmem %s100_s27, 32  ;;  %p4789_p10 = scmp.lt.s32.totalorder %s100_s27, %s100_s27 }
  0x6d   :  { %p4785_p9 = scmp.ne.s32.totalorder %s100_s27, %s4784_s11  ;;  %p4790_p11 = scmp.lt.s32.totalorder %s4784_s11, %s4784_s11 }
  0x6f   :  { %p4791_p12 = por %p4790_p11, %p4789_p10 }
  0x71   :  { %p4792_p13 = pnand %p4791_p12, %p4785_p9 }
  0x73   :  { %4795 = shalt.err (!%p4792_p13)
}
  0x74   :  { %102 = dma.hbm_to_vmem [thread:$0]  %s5314_s13, 32, %s100_s27, [#allocation15]  }
  0x75   :  { %4796 = dma.done.wait [#allocation7], 128  }
  0x76   :  { %4797 = vsyncadd [#allocation7], 4294967168 }
  0x77   :  { %4798 = dma.done.wait [#allocation9], 2064  }
  0x78   :  { %4799 = vsyncadd [#allocation9], 4294965232 }
  0x79   :  { %4800 = dma.done.wait [#allocation12], 96  }
  0x7a   :  { %4801 = vsyncadd [#allocation12], 4294967200 }
  0x7b   :  { %4802 = dma.done.wait [#allocation15], 160  }
  0x7c   :  { %4803 = vsyncadd [#allocation15], 4294967136  ;;  %s128_s23 = sld [smem:[#allocation0]]   ;;  %s4819_s28 = smov 64   ;;  %v4820_v0 = vmov 0.0|0.0   ;;  %vm4821_vm0 = vmmov 0  }
  0x7d   :  { %146 = sst [smem:[#allocation18 + $0x3]] %s4819_s28  ;;  %3588 = vmatprep.subr.bf16.mxu0 %v4820_v0  ;;  %v4822_v1 = vmov 0.0   ;;  %s4823_s13 = smov 256   ;;  %vm245_vm1 = vcmask 261120   ;;  %v4837_v63 = vmov 1966171168  }
  0x7e   :  { %148 = sst [smem:[#allocation18 + $0x4]] %s4815_s0  ;;  %3585 = vmatprep.mubr.msk.f32.mxu0 %vm4821_vm0, %v4822_v1  ;;  %434 = vmatprep.mubr.f32.mxu1 %v4822_v1  ;;  %s4824_s27 = smov [#allocation2]   ;;  %v485_v1 = vlaneseq }
  0x7f   :  { %152 = sst [smem:[#allocation18 + $0x6]] %s4823_s13  ;;  %s136_s15 = sshll.u32 %s4824_s27, 4  ;;  %s137_s15 = int_to_ptr.vmem [resolvable:$true] %s136_s15 }
  0x80   :  { %154 = sst [smem:[#allocation18 + $0x7]] %s4819_s28  ;;  %s4825_s17 = smov 512  }
  0x81   :  { %140 = sst [smem:[#allocation18]] %s4825_s17  ;;  %s4826_s3 = smov 4  }
  0x82   :  { %s3550_s18 = sshll.u32 %s128_s23, 26  ;;  %142 = sst [smem:[#allocation18 + $0x1]] %s4825_s17 }
  0x83   :  { %s5004_s5 = sadd.s32 134217728, %s3550_s18  ;;  %144 = sst [smem:[#allocation18 + $0x2]] %s4826_s3 }
  0x84   :  { %s4827_s29 = smov 2   ;;  %156 = sst [smem:[#allocation18 + $0x8]] %s4826_s3 }
  0x85   :  { %150 = sst [smem:[#allocation18 + $0x5]] %s4827_s29  ;;  %s4828_s16 = smov [#allocation5]  }
  0x86   :  { %s4829_s19 = smov [#allocation17]   ;;  %s4830_s2 = smov 1024  }
  0x87   :  { %158 = dma.general %s5307_s6, 8192, %s137_s15, %s4828_s16, %s4829_s19, [#allocation18], %s5004_s5, 0  }
  0x88   :  { %179 = sst [smem:[#allocation20 + $0x2]] %s4816_s25  ;;  %s4831_s30 = smov [#allocation3]  }
  0x89   :  { %175 = sst [smem:[#allocation20]] %s4830_s2  ;;  %s171_s22 = sshll.u32 %s4831_s30, 4  ;;  %s172_s22 = int_to_ptr.vmem [resolvable:$true] %s171_s22 }
  0x8a   :  { %177 = sst [smem:[#allocation20 + $0x1]] %s4830_s2  ;;  %s4832_s6 = smov [#allocation5 + $0x1]  }
  0x8b   :  { %181 = sst [smem:[#allocation20 + $0x3]] %s4819_s28  ;;  %s4833_s26 = smov [#allocation19]  }
  0x8c   :  { %183 = sst [smem:[#allocation20 + $0x4]] %s4815_s0  ;;  %s4834_s8 = smov [#allocation4]  }
  0x8d   :  { %185 = sst [smem:[#allocation20 + $0x5]] %s4827_s29  ;;  %s206_s24 = sshll.u32 %s4834_s8, 4  ;;  %s207_s24 = int_to_ptr.vmem [resolvable:$true] %s206_s24 }
  0x8e   :  { %187 = sst [smem:[#allocation20 + $0x6]] %s4825_s17  ;;  %s4836_s23 = smov [#allocation21]  }
  0x8f   :  { %189 = sst [smem:[#allocation20 + $0x7]] %s4819_s28 }
  0x90   :  { %191 = sst [smem:[#allocation20 + $0x8]] %s4826_s3 }
  0x91   :  { %193 = dma.general %s5310_s9, 32768, %s172_s22, %s4832_s6, %s4833_s26, [#allocation20], %s5004_s5, 0  }
  0x92   :  { %210 = sst [smem:[#allocation22]] %s4823_s13  ;;  %s4835_s9 = smov [#allocation5 + $0x2]  }
  0x93   :  { %212 = sst [smem:[#allocation22 + $0x1]] %s4823_s13 }
  0x94   :  { %214 = sst [smem:[#allocation22 + $0x2]] %s4827_s29 }
  0x95   :  { %216 = sst [smem:[#allocation22 + $0x3]] %s4819_s28 }
  0x96   :  { %218 = sst [smem:[#allocation22 + $0x4]] %s4815_s0 }
  0x97   :  { %220 = sst [smem:[#allocation22 + $0x5]] %s4827_s29 }
  0x98   :  { %222 = sst [smem:[#allocation22 + $0x6]] %s4815_s0 }
  0x99   :  { %224 = sst [smem:[#allocation22 + $0x7]] %s4819_s28 }
  0x9a   :  { %226 = sst [smem:[#allocation22 + $0x8]] %s4826_s3 }
  0x9b   :  { %228 = dma.general %s5313_s12, 16384, %s207_s24, %s4835_s9, %s4836_s23, [#allocation22], %s5004_s5, 0  }
  0x9c   :  { %v3564_v2 = vld [vmem:[%s5302_s1] sm:$0xff]   ;;  %v3571_v3 = vld [vmem:[%s5302_s1 + $0x8] sm:$0xff]  }
  0x9d   :  { %3590 = vmatpush3.bf16.msra.mxu0 %v3564_v2  ;;  %v4582_v4 = vld [vmem:[#allocation10 + $0x4] ss:$8 sps:$4 sm:$0xff]   ;;  %v4584_v5 = vld [vmem:[#allocation10] ss:$8 sps:$4 sm:$0xff]   ;;  %v4585_v6 = vld [vmem:[#allocation10 + $0x14] ss:$8 sps:$4 sm:$0xff]  }
  0x9e   :  { %3591 = vmatprep.subr.bf16.mxu0 %v4820_v0  ;;  %3595 = vmatprep.subr.bf16.mxu1 %v4582_v4  ;;  %v229_v7 = vld [vmem:[#allocation6] sm:$0xff]  ;;  %v4588_v9 = vld [vmem:[#allocation10 + $0x24] ss:$8 sps:$4 sm:$0xff]   ;;  %v4590_v10 = vld [vmem:[#allocation10 + $0x20] ss:$8 sps:$4 sm:$0xff]   ;;  %v483_v0 = vunpack.c.l.s4 %v4837_v63 }
  0x9f   :  { %3597 = vmatpush1.bf16.msra.mxu1 %v4584_v5  ;;  %v4587_v8 = vld [vmem:[#allocation10 + $0x10] ss:$8 sps:$4 sm:$0xff]   ;;  %v4591_v11 = vld [vmem:[#allocation10 + $0x34] ss:$8 sps:$4 sm:$0xff]   ;;  %v4594_v13 = vld [vmem:[#allocation10 + $0x44] ss:$8 sps:$4 sm:$0xff]  }
  0xa0   :  { %3599 = vmatprep.subr.bf16.mxu1 %v4585_v6  ;;  %v4593_v12 = vld [vmem:[#allocation10 + $0x30] ss:$8 sps:$4 sm:$0xff]   ;;  %v4596_v14 = vld [vmem:[#allocation10 + $0x40] ss:$8 sps:$4 sm:$0xff]   ;;  %v4597_v15 = vld [vmem:[#allocation10 + $0x54] ss:$8 sps:$4 sm:$0xff]   ;;  %v484_v2 = vunpack.c.0.s8 %v483_v0 }
  0xa1   :  { %3593 = vmatpush3.bf16.msra.mxu0 %v3571_v3  ;;  %v4599_v16 = vld [vmem:[#allocation10 + $0x50] ss:$8 sps:$4 sm:$0xff]   ;;  %v4600_v17 = vld [vmem:[#allocation10 + $0x64] ss:$8 sps:$4 sm:$0xff]   ;;  %v4602_v18 = vld [vmem:[#allocation10 + $0x60] ss:$8 sps:$4 sm:$0xff]  }
  0xa2   :  { %v4603_v19 = vld [vmem:[#allocation10 + $0x74] ss:$8 sps:$4 sm:$0xff]   ;;  %v4605_v20 = vld [vmem:[#allocation10 + $0x70] ss:$8 sps:$4 sm:$0xff]   ;;  %v5042_v3 = vshrl.u32 %v485_v1, 7 }
  0xa3   :  { %3601 = vmatpush1.bf16.msra.mxu1 %v4587_v8  ;;  %v3556_v21 = vld [vmem:[#allocation8] ss:$0 sm:$0xff] }
  0xa4   :  { %3586 = vmatmul.mubr.msk.f32.vlgmr.msra.gmra.mrb[0].mxu0 %vm245_vm1, %v229_v7  ;;  %3603 = vmatprep.subr.bf16.mxu1 %v4588_v9  ;;  %v5045_v5 = vsub.s32 %v484_v2, %v5042_v3  ;;  %v474_v9 = vld [vmem:[%s5305_s4] sm:$0x3] }
  0xa7   :  { %3605 = vmatpush1.bf16.msra.mxu1 %v4590_v10 }
  0xa8   :  { %3607 = vmatprep.subr.bf16.mxu1 %v4591_v11  ;;  %v5053_v11 = vsub.s32 0, %v5042_v3 }
  0xab   :  { %3609 = vmatpush1.bf16.msra.mxu1 %v4593_v12  ;;  %v5056_v12 = vsub.s32 1, %v5042_v3 }
  0xac   :  { %3611 = vmatprep.subr.bf16.mxu1 %v4594_v13 }
  0xaf   :  { %3613 = vmatpush1.bf16.msra.mxu1 %v4596_v14 }
  0xb0   :  { %3615 = vmatprep.subr.bf16.mxu1 %v4597_v15 }
  0xb3   :  { %3617 = vmatpush1.bf16.msra.mxu1 %v4599_v16 }
  0xb4   :  { %3619 = vmatprep.subr.bf16.mxu1 %v4600_v17 }
  0xb7   :  { %3621 = vmatpush1.bf16.msra.mxu1 %v4602_v18 }
  0xb8   :  { %3623 = vmatprep.subr.bf16.mxu1 %v4603_v19 }
  0xbb   :  { %3625 = vmatpush1.bf16.msra.mxu1 %v4605_v20 }
 0x177   :  { %v315_v22 = vpop.f32.mrb[0].mxu0 }
 0x178   :  { %v316_v23 = vadd.f32 %v3556_v21, %v315_v22  ;;  %v3587_v24 = vpop.f32.mrb[1].mxu0  ;;  %v498_v22 = vld [vmem:[#allocation11] sm:$0x3] }
 0x17a   :  { %v320_v25 = vmul.f32 0.2, %v316_v23  ;;  %vm319_vm2 = vcmp.gt.f32.partialorder %v316_v23, 0.0 }
 0x17c   :  { %v321_v26 = vsel %vm319_vm2, %v316_v23, %v320_v25 }
 0x17d   :  { %435 = vmatmul.mubr.f32.vlgmr.msra.gmra.mrb[0].mxu1 %v321_v26 }
 0x250   :  { %v436_v27 = vpop.f32.mrb[0].mxu1 }
 0x251   :  { %v441_v28 = vrot.slane %v436_v27, 4  ;;  %v438_v29 = vpop.f32.mrb[1].mxu1 }
 0x252   :  { %v447_v30 = vrot.slane %v438_v29, 4 }
 0x253   :  { %v442_v31 = vadd.f32 %v441_v28, %v436_v27 }
 0x254   :  { %v448_v32 = vadd.f32 %v447_v30, %v438_v29 }
 0x255   :  { %v443_v33 = vrot.slane %v442_v31, 2 }
 0x256   :  { %v449_v34 = vrot.slane %v448_v32, 2 }
 0x257   :  { %v444_v35 = vadd.f32 %v443_v33, %v442_v31 }
 0x258   :  { %v450_v36 = vadd.f32 %v449_v34, %v448_v32 }
 0x259   :  { %v445_v37 = vrot.slane %v444_v35, 1 }
 0x25a   :  { %v451_v38 = vrot.slane %v450_v36, 1 }
 0x25b   :  { %v446_v39 = vadd.f32 %v445_v37, %v444_v35 }
 0x25c   :  { %v452_v40 = vadd.f32 %v451_v38, %v450_v36 }
 0x25d   :  { %v454_v41 = vmul.f32 0.125, %v446_v39 }
 0x25e   :  { %v455_v42 = vmul.f32 0.125, %v452_v40 }
 0x25f   :  { %v456_v43 = vsub.f32 %v436_v27, %v454_v41 }
 0x260   :  { %v457_v44 = vsub.f32 %v438_v29, %v455_v42 }
 0x261   :  { %v458_v45 = vmul.f32 %v456_v43, %v456_v43 }
 0x262   :  { %v459_v46 = vmul.f32 %v457_v44, %v457_v44 }
 0x263   :  { %v460_v47 = vrot.slane %v458_v45, 4 }
 0x264   :  { %v466_v48 = vrot.slane %v459_v46, 4 }
 0x265   :  { %v461_v49 = vadd.f32 %v460_v47, %v458_v45 }
 0x266   :  { %v467_v50 = vadd.f32 %v466_v48, %v459_v46 }
 0x267   :  { %v462_v51 = vrot.slane %v461_v49, 2 }
 0x268   :  { %v468_v52 = vrot.slane %v467_v50, 2 }
 0x269   :  { %v463_v53 = vadd.f32 %v462_v51, %v461_v49 }
 0x26a   :  { %v469_v54 = vadd.f32 %v468_v52, %v467_v50 }
 0x26b   :  { %v464_v55 = vrot.slane %v463_v53, 1 }
 0x26c   :  { %v470_v56 = vrot.slane %v469_v54, 1 }
 0x26d   :  { %v465_v57 = vadd.f32 %v464_v55, %v463_v53 }
 0x26e   :  { %v471_v58 = vadd.f32 %v470_v56, %v469_v54 }
 0x26f   :  { %v472_v59 = vmul.f32 0.125, %v465_v57 }
 0x270   :  { %v473_v60 = vmul.f32 0.125, %v471_v58 }
 0x271   :  { %v475_v61 = vadd.f32 0.8, %v472_v59 }
 0x272   :  { %v476_v62 = vadd.f32 0.8, %v473_v60 }
 0x273   :  { %4606 = vrsqrt.f32 %v475_v61 }
 0x274   :  { %4608 = vrsqrt.f32 %v476_v62 }
 0x27d   :  { %v4607_v4 = vpop.eup %4606 }
 0x27e   :  { %v4609_v6 = vpop.eup %4608 }
 0x27f   :  { %v481_v7 = vcombine.low %v4607_v4, %v4609_v6 }
 0x281   :  { %v488_v8 = vrot.slane %v481_v7, %v5045_v5 }
 0x283   :  { %v495_v10 = vrot.slane %v488_v8, %v5045_v5 }
 0x285   :  { %v497_v13 = vmul.f32 %v495_v10, %v474_v9 }
 0x287   :  { %v503_v14 = vrot.slane %v497_v13, %v5053_v11  ;;  %v507_v15 = vrot.slane %v497_v13, %v5056_v12 }
 0x289   :  { %v510_v16 = vmul.f32 %v503_v14, %v454_v41  ;;  %v511_v17 = vmul.f32 %v507_v15, %v455_v42  ;;  %v531_v18 = vmul.f32 %v503_v14, %v436_v27  ;;  %v532_v19 = vmul.f32 %v507_v15, %v438_v29 }
 0x28b   :  { %v514_v20 = vcombine.low %v510_v16, %v511_v17 }
 0x28d   :  { %v521_v21 = vrot.slane %v514_v20, %v5045_v5 }
 0x28f   :  { %v528_v23 = vrot.slane %v521_v21, %v5045_v5 }
 0x291   :  { %v530_v24 = vsub.f32 %v498_v22, %v528_v23 }
 0x293   :  { %v537_v25 = vrot.slane %v530_v24, %v5053_v11  ;;  %v541_v26 = vrot.slane %v530_v24, %v5056_v12 }
 0x295   :  { %v544_v28 = vadd.f32 %v537_v25, %v531_v18  ;;  %v545_v30 = vadd.f32 %v541_v26, %v532_v19 }
 0x297   :  { %vm546_vm3 = vcmp.gt.f32.partialorder %v544_v28, 0.0  ;;  %vm547_vm4 = vcmp.gt.f32.partialorder %v545_v30, 0.0  ;;  %v548_v31 = vmul.f32 0.2, %v544_v28  ;;  %v549_v32 = vmul.f32 0.2, %v545_v30 }
 0x299   :  { %v5064_v33 = vsel %vm546_vm3, %v544_v28, %v548_v31  ;;  %v5066_v27 = vsel %vm547_vm4, %v545_v30, %v549_v32 }
 0x29a   :  { %4804 = dma.done.wait [#allocation5], 8192 }
 0x29b   :  { %4805 = vsyncadd [#allocation5], 4294959104  ;;  %812 = vmatprep.mubr.f32.mxu1 %v5066_v27  ;;  %v557_v29 = vld [vmem:[#allocation2 + $0x8] sm:$0xff]  ;;  %v556_v34 = vld [vmem:[#allocation2] sm:$0xff] }
 0x29c   :  { %v561_v35 = vld [vmem:[#allocation2 + $0x28] sm:$0xff]  ;;  %3627 = vmatprep.subr.bf16.mxu1 %v557_v29  ;;  %v560_v36 = vld [vmem:[#allocation2 + $0x20] sm:$0xff]  ;;  %v559_v1 = vld [vmem:[#allocation2 + $0x18] sm:$0xff] }
 0x29d   :  { %3629 = vmatpush1.bf16.msra.mxu1 %v556_v34  ;;  %v565_v37 = vld [vmem:[#allocation2 + $0x48] sm:$0xff]  ;;  %v564_v38 = vld [vmem:[#allocation2 + $0x40] sm:$0xff]  ;;  %v558_v2 = vld [vmem:[#allocation2 + $0x10] sm:$0xff] }
 0x29e   :  { %3631 = vmatprep.subr.bf16.mxu1 %v561_v35  ;;  %v569_v39 = vld [vmem:[#allocation2 + $0x68] sm:$0xff]  ;;  %v568_v40 = vld [vmem:[#allocation2 + $0x60] sm:$0xff]  ;;  %v563_v4 = vld [vmem:[#allocation2 + $0x38] sm:$0xff] }
 0x29f   :  { %v573_v41 = vld [vmem:[#allocation2 + $0x88] sm:$0xff]  ;;  %v572_v42 = vld [vmem:[#allocation2 + $0x80] sm:$0xff]  ;;  %v562_v6 = vld [vmem:[#allocation2 + $0x30] sm:$0xff] }
 0x2a0   :  { %v577_v43 = vld [vmem:[#allocation2 + $0xa8] sm:$0xff]  ;;  %v576_v44 = vld [vmem:[#allocation2 + $0xa0] sm:$0xff]  ;;  %v567_v7 = vld [vmem:[#allocation2 + $0x58] sm:$0xff] }
 0x2a1   :  { %3633 = vmatpush1.bf16.msra.mxu1 %v560_v36  ;;  %v581_v45 = vld [vmem:[#allocation2 + $0xc8] sm:$0xff]  ;;  %v580_v46 = vld [vmem:[#allocation2 + $0xc0] sm:$0xff]  ;;  %v566_v8 = vld [vmem:[#allocation2 + $0x50] sm:$0xff] }
 0x2a2   :  { %3635 = vmatprep.subr.bf16.mxu1 %v565_v37  ;;  %v585_v47 = vld [vmem:[#allocation2 + $0xe8] sm:$0xff]  ;;  %v584_v48 = vld [vmem:[#allocation2 + $0xe0] sm:$0xff]  ;;  %v571_v9 = vld [vmem:[#allocation2 + $0x78] sm:$0xff] }
 0x2a3   :  { %v589_v49 = vld [vmem:[#allocation2 + $0x108] sm:$0xff]  ;;  %v588_v50 = vld [vmem:[#allocation2 + $0x100] sm:$0xff]  ;;  %v570_v10 = vld [vmem:[#allocation2 + $0x70] sm:$0xff] }
 0x2a4   :  { %v593_v51 = vld [vmem:[#allocation2 + $0x128] sm:$0xff]  ;;  %v592_v52 = vld [vmem:[#allocation2 + $0x120] sm:$0xff]  ;;  %v575_v13 = vld [vmem:[#allocation2 + $0x98] sm:$0xff] }
 0x2a5   :  { %3637 = vmatpush1.bf16.msra.mxu1 %v564_v38  ;;  %v597_v53 = vld [vmem:[#allocation2 + $0x148] sm:$0xff]  ;;  %v596_v54 = vld [vmem:[#allocation2 + $0x140] sm:$0xff]  ;;  %v574_v14 = vld [vmem:[#allocation2 + $0x90] sm:$0xff] }
 0x2a6   :  { %3639 = vmatprep.subr.bf16.mxu1 %v569_v39  ;;  %v601_v55 = vld [vmem:[#allocation2 + $0x168] sm:$0xff]  ;;  %v600_v56 = vld [vmem:[#allocation2 + $0x160] sm:$0xff]  ;;  %v579_v15 = vld [vmem:[#allocation2 + $0xb8] sm:$0xff] }
 0x2a7   :  { %v605_v57 = vld [vmem:[#allocation2 + $0x188] sm:$0xff]  ;;  %v604_v58 = vld [vmem:[#allocation2 + $0x180] sm:$0xff]  ;;  %v578_v16 = vld [vmem:[#allocation2 + $0xb0] sm:$0xff] }
 0x2a8   :  { %v609_v59 = vld [vmem:[#allocation2 + $0x1a8] sm:$0xff]  ;;  %v608_v60 = vld [vmem:[#allocation2 + $0x1a0] sm:$0xff]  ;;  %v583_v17 = vld [vmem:[#allocation2 + $0xd8] sm:$0xff] }
 0x2a9   :  { %3641 = vmatpush1.bf16.msra.mxu1 %v568_v40  ;;  %v613_v61 = vld [vmem:[#allocation2 + $0x1c8] sm:$0xff]  ;;  %v612_v62 = vld [vmem:[#allocation2 + $0x1c0] sm:$0xff]  ;;  %v582_v18 = vld [vmem:[#allocation2 + $0xd0] sm:$0xff] }
 0x2aa   :  { %3643 = vmatprep.subr.bf16.mxu1 %v573_v41  ;;  %v617_v63 = vld [vmem:[#allocation2 + $0x1e8] sm:$0xff]  ;;  %v616_v0 = vld [vmem:[#allocation2 + $0x1e0] sm:$0xff]  ;;  %v587_v19 = vld [vmem:[#allocation2 + $0xf8] sm:$0xff] }
 0x2ab   :  { %v586_v20 = vld [vmem:[#allocation2 + $0xf0] sm:$0xff]  ;;  %v591_v21 = vld [vmem:[#allocation2 + $0x118] sm:$0xff] }
 0x2ac   :  { %v590_v22 = vld [vmem:[#allocation2 + $0x110] sm:$0xff]  ;;  %v595_v23 = vld [vmem:[#allocation2 + $0x138] sm:$0xff] }
 0x2ad   :  { %3645 = vmatpush1.bf16.msra.mxu1 %v572_v42  ;;  %v594_v24 = vld [vmem:[#allocation2 + $0x130] sm:$0xff]  ;;  %v599_v25 = vld [vmem:[#allocation2 + $0x158] sm:$0xff] }
 0x2ae   :  { %3647 = vmatprep.subr.bf16.mxu1 %v577_v43  ;;  %v598_v26 = vld [vmem:[#allocation2 + $0x150] sm:$0xff]  ;;  %v603_v28 = vld [vmem:[#allocation2 + $0x178] sm:$0xff] }
 0x2af   :  { %v602_v30 = vld [vmem:[#allocation2 + $0x170] sm:$0xff]  ;;  %v607_v31 = vld [vmem:[#allocation2 + $0x198] sm:$0xff] }
 0x2b0   :  { %v606_v32 = vld [vmem:[#allocation2 + $0x190] sm:$0xff]  ;;  %v615_v34 = vld [vmem:[#allocation2 + $0x1d8] sm:$0xff] }
 0x2b1   :  { %3649 = vmatpush1.bf16.msra.mxu1 %v576_v44  ;;  %v610_v29 = vld [vmem:[#allocation2 + $0x1b0] sm:$0xff]  ;;  %v619_v36 = vld [vmem:[#allocation2 + $0x1f8] sm:$0xff] }
 0x2b2   :  { %3651 = vmatprep.subr.bf16.mxu1 %v581_v45  ;;  %v614_v35 = vld [vmem:[#allocation2 + $0x1d0] sm:$0xff] }
 0x2b3   :  { %v618_v37 = vld [vmem:[#allocation2 + $0x1f0] sm:$0xff] }
 0x2b5   :  { %3653 = vmatpush1.bf16.msra.mxu1 %v580_v46 }
 0x2b6   :  { %3655 = vmatprep.subr.bf16.mxu1 %v585_v47 }
 0x2b9   :  { %3657 = vmatpush1.bf16.msra.mxu1 %v584_v48 }
 0x2ba   :  { %3659 = vmatprep.subr.bf16.mxu1 %v589_v49 }
 0x2bd   :  { %3661 = vmatpush1.bf16.msra.mxu1 %v588_v50 }
 0x2be   :  { %3663 = vmatprep.subr.bf16.mxu1 %v593_v51 }
 0x2c1   :  { %3665 = vmatpush1.bf16.msra.mxu1 %v592_v52 }
 0x2c2   :  { %3667 = vmatprep.subr.bf16.mxu1 %v597_v53 }
 0x2c5   :  { %3669 = vmatpush1.bf16.msra.mxu1 %v596_v54 }
 0x2c6   :  { %3671 = vmatprep.subr.bf16.mxu1 %v601_v55 }
 0x2c9   :  { %3673 = vmatpush1.bf16.msra.mxu1 %v600_v56 }
 0x2ca   :  { %3675 = vmatprep.subr.bf16.mxu1 %v605_v57 }
 0x2cd   :  { %3677 = vmatpush1.bf16.msra.mxu1 %v604_v58 }
 0x2ce   :  { %3679 = vmatprep.subr.bf16.mxu1 %v609_v59 }
 0x2d1   :  { %3681 = vmatpush1.bf16.msra.mxu1 %v608_v60 }
 0x2d2   :  { %3683 = vmatprep.subr.bf16.mxu1 %v613_v61 }
 0x2d5   :  { %3685 = vmatpush1.bf16.msra.mxu1 %v612_v62 }
 0x2d6   :  { %3687 = vmatprep.subr.bf16.mxu1 %v617_v63 }
 0x2d9   :  { %3689 = vmatpush1.bf16.msra.mxu1 %v616_v0 }
 0x2da   :  { %3691 = vmatprep.subr.bf16.mxu1 %v559_v1 }
 0x2dc   :  { %813 = vmatmul.mubr.f32.vlgmr.msra.gmra.mrb[2].mxu1 %v5064_v33 }
 0x2dd   :  { %3693 = vmatpush1.bf16.msra.mxu1 %v558_v2  ;;  %883 = vmatprep.mubr.f32.mxu1 %v5066_v27  ;;  %v611_v27 = vld [vmem:[#allocation2 + $0x1b8] sm:$0xff] }
 0x2de   :  { %3695 = vmatprep.subr.bf16.mxu1 %v563_v4 }
 0x2e1   :  { %3697 = vmatpush1.bf16.msra.mxu1 %v562_v6 }
 0x2e2   :  { %3699 = vmatprep.subr.bf16.mxu1 %v567_v7 }
 0x2e5   :  { %3701 = vmatpush1.bf16.msra.mxu1 %v566_v8 }
 0x2e6   :  { %3703 = vmatprep.subr.bf16.mxu1 %v571_v9 }
 0x2e9   :  { %3705 = vmatpush1.bf16.msra.mxu1 %v570_v10 }
 0x2ea   :  { %3707 = vmatprep.subr.bf16.mxu1 %v575_v13 }
 0x2ed   :  { %3709 = vmatpush1.bf16.msra.mxu1 %v574_v14 }
 0x2ee   :  { %3711 = vmatprep.subr.bf16.mxu1 %v579_v15 }
 0x2f1   :  { %3713 = vmatpush1.bf16.msra.mxu1 %v578_v16 }
 0x2f2   :  { %3715 = vmatprep.subr.bf16.mxu1 %v583_v17 }
 0x2f5   :  { %3717 = vmatpush1.bf16.msra.mxu1 %v582_v18 }
 0x2f6   :  { %3719 = vmatprep.subr.bf16.mxu1 %v587_v19 }
 0x2f9   :  { %3721 = vmatpush1.bf16.msra.mxu1 %v586_v20 }
 0x2fa   :  { %3723 = vmatprep.subr.bf16.mxu1 %v591_v21 }
 0x2fd   :  { %3725 = vmatpush1.bf16.msra.mxu1 %v590_v22 }
 0x2fe   :  { %3727 = vmatprep.subr.bf16.mxu1 %v595_v23 }
 0x301   :  { %3729 = vmatpush1.bf16.msra.mxu1 %v594_v24 }
 0x302   :  { %3731 = vmatprep.subr.bf16.mxu1 %v599_v25 }
 0x305   :  { %3733 = vmatpush1.bf16.msra.mxu1 %v598_v26 }
 0x306   :  { %3735 = vmatprep.subr.bf16.mxu1 %v603_v28 }
 0x309   :  { %3737 = vmatpush1.bf16.msra.mxu1 %v602_v30 }
 0x30a   :  { %3739 = vmatprep.subr.bf16.mxu1 %v607_v31 }
 0x30d   :  { %3741 = vmatpush1.bf16.msra.mxu1 %v606_v32 }
 0x30e   :  { %3743 = vmatprep.subr.bf16.mxu1 %v611_v27 }
 0x311   :  { %3745 = vmatpush1.bf16.msra.mxu1 %v610_v29 }
 0x312   :  { %3747 = vmatprep.subr.bf16.mxu1 %v615_v34 }
 0x315   :  { %3749 = vmatpush1.bf16.msra.mxu1 %v614_v35 }
 0x316   :  { %3751 = vmatprep.subr.bf16.mxu1 %v619_v36 }
 0x319   :  { %3753 = vmatpush1.bf16.msra.mxu1 %v618_v37 }
 0x31c   :  { %884 = vmatmul.mubr.f32.vlgmr.msra.gmra.mrb[4].mxu1 %v5064_v33 }
 0x3af   :  { %v5072_v38 = vpop.f32.mrb[2].mxu1 }
 0x3b0   :  { %v890_v39 = vrot.slane %v5072_v38, 4  ;;  %v5075_v40 = vpop.f32.mrb[3].mxu1 }
 0x3b1   :  { %v896_v41 = vrot.slane %v5075_v40, 4 }
 0x3b2   :  { %v891_v42 = vadd.f32 %v890_v39, %v5072_v38 }
 0x3b3   :  { %v897_v43 = vadd.f32 %v896_v41, %v5075_v40 }
 0x3b4   :  { %v892_v44 = vrot.slane %v891_v42, 2 }
 0x3b5   :  { %v898_v45 = vrot.slane %v897_v43, 2 }
 0x3b6   :  { %v893_v46 = vadd.f32 %v892_v44, %v891_v42 }
 0x3b7   :  { %v899_v47 = vadd.f32 %v898_v45, %v897_v43 }
 0x3b8   :  { %v894_v48 = vrot.slane %v893_v46, 1 }
 0x3b9   :  { %v900_v49 = vrot.slane %v899_v47, 1 }
 0x3ba   :  { %v895_v50 = vadd.f32 %v894_v48, %v893_v46 }
 0x3bb   :  { %v901_v33 = vadd.f32 %v900_v49, %v899_v47 }
 0x3bc   :  { %v5080_v51 = vmul.f32 0.125, %v895_v50 }
 0x3bd   :  { %v5082_v52 = vmul.f32 0.125, %v901_v33 }
 0x3be   :  { %v918_v53 = vsub.f32 %v5072_v38, %v5080_v51 }
 0x3bf   :  { %v919_v54 = vsub.f32 %v5075_v40, %v5082_v52 }
 0x3c0   :  { %v922_v55 = vmul.f32 %v918_v53, %v918_v53 }
 0x3c1   :  { %v923_v56 = vmul.f32 %v919_v54, %v919_v54 }
 0x3c2   :  { %v926_v57 = vrot.slane %v922_v55, 4 }
 0x3c3   :  { %v932_v58 = vrot.slane %v923_v56, 4 }
 0x3c4   :  { %v927_v59 = vadd.f32 %v926_v57, %v922_v55 }
 0x3c5   :  { %v933_v60 = vadd.f32 %v932_v58, %v923_v56 }
 0x3c6   :  { %v928_v61 = vrot.slane %v927_v59, 2 }
 0x3c7   :  { %v934_v62 = vrot.slane %v933_v60, 2 }
 0x3c8   :  { %v929_v63 = vadd.f32 %v928_v61, %v927_v59 }
 0x3c9   :  { %v935_v0 = vadd.f32 %v934_v62, %v933_v60  ;;  %v954_v62 = vld [vmem:[%s5308_s7] sm:$0xf] }
 0x3ca   :  { %v930_v1 = vrot.slane %v929_v63, 1 }
 0x3cb   :  { %v936_v2 = vrot.slane %v935_v0, 1 }
 0x3cc   :  { %v931_v4 = vadd.f32 %v930_v1, %v929_v63  ;;  %v5098_v1 = vsub.s32 3, %v5042_v3 }
 0x3cd   :  { %v937_v6 = vadd.f32 %v936_v2, %v935_v0  ;;  %v5095_v0 = vsub.s32 2, %v5042_v3 }
 0x3ce   :  { %v950_v7 = vmul.f32 0.125, %v931_v4 }
 0x3cf   :  { %v951_v8 = vmul.f32 0.125, %v937_v6 }
 0x3d0   :  { %v955_v9 = vadd.f32 0.8, %v950_v7 }
 0x3d1   :  { %v956_v10 = vadd.f32 0.8, %v951_v8 }
 0x3d2   :  { %4610 = vrsqrt.f32 %v955_v9 }
 0x3d3   :  { %4612 = vrsqrt.f32 %v956_v10 }
 0x3dc   :  { %v4611_v13 = vpop.eup %4610 }
 0x3dd   :  { %v4613_v14 = vpop.eup %4612 }
 0x3de   :  { %v967_v15 = vcombine.low %v4611_v13, %v4613_v14 }
 0x3e0   :  { %v975_v59 = vrot.slane %v967_v15, %v5045_v5 }
 0x3ef   :  { %v885_v16 = vpop.f32.mrb[4].mxu1 }
 0x3f0   :  { %v902_v17 = vrot.slane %v885_v16, 4  ;;  %v887_v18 = vpop.f32.mrb[5].mxu1 }
 0x3f1   :  { %v908_v19 = vrot.slane %v887_v18, 4 }
 0x3f2   :  { %v903_v20 = vadd.f32 %v902_v17, %v885_v16 }
 0x3f3   :  { %v909_v21 = vadd.f32 %v908_v19, %v887_v18 }
 0x3f4   :  { %v904_v22 = vrot.slane %v903_v20, 2 }
 0x3f5   :  { %v910_v23 = vrot.slane %v909_v21, 2 }
 0x3f6   :  { %v905_v24 = vadd.f32 %v904_v22, %v903_v20 }
 0x3f7   :  { %v911_v25 = vadd.f32 %v910_v23, %v909_v21 }
 0x3f8   :  { %v906_v26 = vrot.slane %v905_v24, 1 }
 0x3f9   :  { %v912_v28 = vrot.slane %v911_v25, 1 }
 0x3fa   :  { %v907_v30 = vadd.f32 %v906_v26, %v905_v24  ;;  %v993_v26 = vld [vmem:[#allocation13] sm:$0xf] }
 0x3fb   :  { %v913_v31 = vadd.f32 %v912_v28, %v911_v25 }
 0x3fc   :  { %v916_v32 = vmul.f32 0.125, %v907_v30 }
 0x3fd   :  { %v917_v27 = vmul.f32 0.125, %v913_v31 }
 0x3fe   :  { %v920_v29 = vsub.f32 %v885_v16, %v916_v32 }
 0x3ff   :  { %v921_v34 = vsub.f32 %v887_v18, %v917_v27 }
 0x400   :  { %v924_v35 = vmul.f32 %v920_v29, %v920_v29 }
 0x401   :  { %v925_v36 = vmul.f32 %v921_v34, %v921_v34 }
 0x402   :  { %v938_v37 = vrot.slane %v924_v35, 4 }
 0x403   :  { %v944_v39 = vrot.slane %v925_v36, 4 }
 0x404   :  { %v939_v41 = vadd.f32 %v938_v37, %v924_v35 }
 0x405   :  { %v945_v42 = vadd.f32 %v944_v39, %v925_v36 }
 0x406   :  { %v940_v43 = vrot.slane %v939_v41, 2 }
 0x407   :  { %v946_v44 = vrot.slane %v945_v42, 2 }
 0x408   :  { %v941_v45 = vadd.f32 %v940_v43, %v939_v41 }
 0x409   :  { %v947_v46 = vadd.f32 %v946_v44, %v945_v42 }
 0x40a   :  { %v942_v47 = vrot.slane %v941_v45, 1 }
 0x40b   :  { %v948_v48 = vrot.slane %v947_v46, 1 }
 0x40c   :  { %v943_v49 = vadd.f32 %v942_v47, %v941_v45 }
 0x40d   :  { %v949_v50 = vadd.f32 %v948_v48, %v947_v46 }
 0x40e   :  { %v952_v33 = vmul.f32 0.125, %v943_v49 }
 0x40f   :  { %v953_v53 = vmul.f32 0.125, %v949_v50 }
 0x410   :  { %v957_v54 = vadd.f32 0.8, %v952_v33 }
 0x411   :  { %v958_v55 = vadd.f32 0.8, %v953_v53 }
 0x412   :  { %4614 = vrsqrt.f32 %v957_v54 }
 0x413   :  { %4616 = vrsqrt.f32 %v958_v55 }
 0x41c   :  { %v4615_v56 = vpop.eup %4614 }
 0x41d   :  { %v4617_v57 = vpop.eup %4616 }
 0x41e   :  { %v968_v58 = vcombine.low %v4615_v56, %v4617_v57 }
 0x420   :  { %v982_v60 = vrot.slane %v968_v58, %v5045_v5 }
 0x422   :  { %v983_v61 = vcombine.low %v975_v59, %v982_v60 }
 0x424   :  { %v990_v63 = vrot.slane %v983_v61, %v5045_v5 }
 0x426   :  { %v992_v2 = vmul.f32 %v990_v63, %v954_v62 }
 0x428   :  { %v998_v4 = vrot.slane %v992_v2, %v5053_v11  ;;  %v1002_v6 = vrot.slane %v992_v2, %v5056_v12  ;;  %v1006_v7 = vrot.slane %v992_v2, %v5095_v0  ;;  %v1010_v8 = vrot.slane %v992_v2, %v5098_v1 }
 0x42a   :  { %v1015_v9 = vmul.f32 %v998_v4, %v5080_v51  ;;  %v1016_v10 = vmul.f32 %v1002_v6, %v5082_v52  ;;  %v1017_v13 = vmul.f32 %v1006_v7, %v916_v32  ;;  %v1018_v14 = vmul.f32 %v1010_v8, %v917_v27 }
 0x42b   :  { %v1049_v15 = vmul.f32 %v998_v4, %v5072_v38  ;;  %v1050_v17 = vmul.f32 %v1002_v6, %v5075_v40  ;;  %v1051_v19 = vmul.f32 %v1006_v7, %v885_v16  ;;  %v1052_v20 = vmul.f32 %v1010_v8, %v887_v18 }
 0x42c   :  { %v1023_v21 = vcombine.low %v1015_v9, %v1016_v10  ;;  %v1024_v22 = vcombine.low %v1017_v13, %v1018_v14 }
 0x42e   :  { %v1031_v23 = vrot.slane %v1023_v21, %v5045_v5  ;;  %v1038_v24 = vrot.slane %v1024_v22, %v5045_v5 }
 0x430   :  { %v1039_v25 = vcombine.low %v1031_v23, %v1038_v24 }
 0x432   :  { %v1046_v51 = vrot.slane %v1039_v25, %v5045_v5 }
 0x434   :  { %v1048_v28 = vsub.f32 %v993_v26, %v1046_v51 }
 0x436   :  { %v1057_v52 = vrot.slane %v1048_v28, %v5053_v11  ;;  %v1061_v30 = vrot.slane %v1048_v28, %v5056_v12  ;;  %v1065_v38 = vrot.slane %v1048_v28, %v5095_v0  ;;  %v1069_v40 = vrot.slane %v1048_v28, %v5098_v1 }
 0x438   :  { %v1074_v16 = vadd.f32 %v1057_v52, %v1049_v15  ;;  %v1075_v18 = vadd.f32 %v1061_v30, %v1050_v17  ;;  %v1076_v31 = vadd.f32 %v1065_v38, %v1051_v19  ;;  %v1077_v32 = vadd.f32 %v1069_v40, %v1052_v20 }
 0x43a   :  { %vm1078_vm5 = vcmp.gt.f32.partialorder %v1074_v16, 0.0  ;;  %vm1079_vm6 = vcmp.gt.f32.partialorder %v1075_v18, 0.0  ;;  %vm1080_vm7 = vcmp.gt.f32.partialorder %v1076_v31, 0.0  ;;  %vm1081_vm8 = vcmp.gt.f32.partialorder %v1077_v32, 0.0 }
 0x43b   :  { %v1082_v27 = vmul.f32 0.2, %v1074_v16  ;;  %v1083_v29 = vmul.f32 0.2, %v1075_v18  ;;  %v1084_v34 = vmul.f32 0.2, %v1076_v31 }
 0x43c   :  { %v1085_v35 = vmul.f32 0.2, %v1077_v32 }
 0x43d   :  { %v5115_v36 = vsel %vm1078_vm5, %v1074_v16, %v1082_v27  ;;  %v5117_v37 = vsel %vm1079_vm6, %v1075_v18, %v1083_v29  ;;  %v5119_v39 = vsel %vm1080_vm7, %v1076_v31, %v1084_v34 }
 0x43e   :  { %v5121_v41 = vsel %vm1081_vm8, %v1077_v32, %v1085_v35 }
 0x43f   :  { %4806 = dma.done.wait [#allocation5 + $0x1], 32768 }
 0x440   :  { %4807 = vsyncadd [#allocation5 + $0x1], 4294934528  ;;  %1926 = vmatprep.mubr.f32.mxu1 %v5117_v37  ;;  %1997 = vmatprep.mubr.f32.mxu0 %v5121_v41  ;;  %v1095_v42 = vld [vmem:[#allocation3 + $0x8] sm:$0xff]  ;;  %v1094_v44 = vld [vmem:[#allocation3] sm:$0xff] }
 0x441   :  { %v1223_v43 = vld [vmem:[#allocation3 + $0x408] sm:$0xff]  ;;  %3755 = vmatprep.subr.bf16.mxu1 %v1095_v42  ;;  %v1222_v45 = vld [vmem:[#allocation3 + $0x400] sm:$0xff] }
 0x442   :  { %3819 = vmatprep.subr.bf16.mxu0 %v1223_v43  ;;  %v1103_v46 = vld [vmem:[#allocation3 + $0x48] sm:$0xff]  ;;  %3757 = vmatpush1.bf16.msra.mxu1 %v1094_v44  ;;  %v1102_v48 = vld [vmem:[#allocation3 + $0x40] sm:$0xff] }
 0x443   :  { %v1231_v47 = vld [vmem:[#allocation3 + $0x448] sm:$0xff]  ;;  %3821 = vmatpush1.bf16.msra.mxu0 %v1222_v45  ;;  %3759 = vmatprep.subr.bf16.mxu1 %v1103_v46  ;;  %v1230_v49 = vld [vmem:[#allocation3 + $0x440] sm:$0xff] }
 0x444   :  { %3823 = vmatprep.subr.bf16.mxu0 %v1231_v47  ;;  %v1111_v50 = vld [vmem:[#allocation3 + $0x88] sm:$0xff]  ;;  %v1110_v53 = vld [vmem:[#allocation3 + $0x80] sm:$0xff] }
 0x445   :  { %v1239_v33 = vld [vmem:[#allocation3 + $0x488] sm:$0xff]  ;;  %v1238_v54 = vld [vmem:[#allocation3 + $0x480] sm:$0xff] }
 0x446   :  { %3761 = vmatpush1.bf16.msra.mxu1 %v1102_v48  ;;  %v1119_v55 = vld [vmem:[#allocation3 + $0xc8] sm:$0xff]  ;;  %v1118_v57 = vld [vmem:[#allocation3 + $0xc0] sm:$0xff] }
 0x447   :  { %3825 = vmatpush1.bf16.msra.mxu0 %v1230_v49  ;;  %3763 = vmatprep.subr.bf16.mxu1 %v1111_v50  ;;  %v1247_v56 = vld [vmem:[#allocation3 + $0x4c8] sm:$0xff]  ;;  %v1246_v58 = vld [vmem:[#allocation3 + $0x4c0] sm:$0xff] }
 0x448   :  { %3827 = vmatprep.subr.bf16.mxu0 %v1239_v33  ;;  %v1127_v59 = vld [vmem:[#allocation3 + $0x108] sm:$0xff]  ;;  %v1126_v61 = vld [vmem:[#allocation3 + $0x100] sm:$0xff] }
 0x449   :  { %v1255_v60 = vld [vmem:[#allocation3 + $0x508] sm:$0xff]  ;;  %v1254_v62 = vld [vmem:[#allocation3 + $0x500] sm:$0xff] }
 0x44a   :  { %3765 = vmatpush1.bf16.msra.mxu1 %v1110_v53  ;;  %v1135_v63 = vld [vmem:[#allocation3 + $0x148] sm:$0xff]  ;;  %v1134_v4 = vld [vmem:[#allocation3 + $0x140] sm:$0xff]  ;;  %v1097_v53 = vld [vmem:[#allocation3 + $0x18] sm:$0xff] }
 0x44b   :  { %3829 = vmatpush1.bf16.msra.mxu0 %v1238_v54  ;;  %3767 = vmatprep.subr.bf16.mxu1 %v1119_v55  ;;  %v1263_v2 = vld [vmem:[#allocation3 + $0x548] sm:$0xff]  ;;  %v1262_v6 = vld [vmem:[#allocation3 + $0x540] sm:$0xff]  ;;  %v1096_v55 = vld [vmem:[#allocation3 + $0x10] sm:$0xff] }
 0x44c   :  { %3831 = vmatprep.subr.bf16.mxu0 %v1247_v56  ;;  %v1143_v7 = vld [vmem:[#allocation3 + $0x188] sm:$0xff]  ;;  %v1142_v9 = vld [vmem:[#allocation3 + $0x180] sm:$0xff] }
 0x44d   :  { %v1271_v8 = vld [vmem:[#allocation3 + $0x588] sm:$0xff]  ;;  %v1270_v10 = vld [vmem:[#allocation3 + $0x580] sm:$0xff] }
 0x44e   :  { %3769 = vmatpush1.bf16.msra.mxu1 %v1118_v57  ;;  %v1151_v13 = vld [vmem:[#allocation3 + $0x1c8] sm:$0xff]  ;;  %v1150_v15 = vld [vmem:[#allocation3 + $0x1c0] sm:$0xff]  ;;  %v1105_v57 = vld [vmem:[#allocation3 + $0x58] sm:$0xff] }
 0x44f   :  { %3833 = vmatpush1.bf16.msra.mxu0 %v1246_v58  ;;  %3771 = vmatprep.subr.bf16.mxu1 %v1127_v59  ;;  %v1279_v14 = vld [vmem:[#allocation3 + $0x5c8] sm:$0xff]  ;;  %v1278_v17 = vld [vmem:[#allocation3 + $0x5c0] sm:$0xff]  ;;  %v1104_v59 = vld [vmem:[#allocation3 + $0x50] sm:$0xff] }
 0x450   :  { %3835 = vmatprep.subr.bf16.mxu0 %v1255_v60  ;;  %v1159_v19 = vld [vmem:[#allocation3 + $0x208] sm:$0xff]  ;;  %v1158_v21 = vld [vmem:[#allocation3 + $0x200] sm:$0xff] }
 0x451   :  { %v1287_v20 = vld [vmem:[#allocation3 + $0x608] sm:$0xff]  ;;  %v1286_v22 = vld [vmem:[#allocation3 + $0x600] sm:$0xff] }
 0x452   :  { %3773 = vmatpush1.bf16.msra.mxu1 %v1126_v61  ;;  %v1167_v23 = vld [vmem:[#allocation3 + $0x248] sm:$0xff]  ;;  %v1166_v25 = vld [vmem:[#allocation3 + $0x240] sm:$0xff]  ;;  %v1113_v61 = vld [vmem:[#allocation3 + $0x98] sm:$0xff] }
 0x453   :  { %3837 = vmatpush1.bf16.msra.mxu0 %v1254_v62  ;;  %3775 = vmatprep.subr.bf16.mxu1 %v1135_v63  ;;  %v1295_v24 = vld [vmem:[#allocation3 + $0x648] sm:$0xff]  ;;  %v1294_v26 = vld [vmem:[#allocation3 + $0x640] sm:$0xff]  ;;  %v1112_v63 = vld [vmem:[#allocation3 + $0x90] sm:$0xff] }
 0x454   :  { %3839 = vmatprep.subr.bf16.mxu0 %v1263_v2  ;;  %v1175_v51 = vld [vmem:[#allocation3 + $0x288] sm:$0xff]  ;;  %v1174_v52 = vld [vmem:[#allocation3 + $0x280] sm:$0xff] }
 0x455   :  { %v1303_v28 = vld [vmem:[#allocation3 + $0x688] sm:$0xff]  ;;  %v1302_v30 = vld [vmem:[#allocation3 + $0x680] sm:$0xff] }
 0x456   :  { %3777 = vmatpush1.bf16.msra.mxu1 %v1134_v4  ;;  %v1183_v38 = vld [vmem:[#allocation3 + $0x2c8] sm:$0xff]  ;;  %v1182_v16 = vld [vmem:[#allocation3 + $0x2c0] sm:$0xff]  ;;  %v1121_v4 = vld [vmem:[#allocation3 + $0xd8] sm:$0xff] }
 0x457   :  { %3841 = vmatpush1.bf16.msra.mxu0 %v1262_v6  ;;  %3779 = vmatprep.subr.bf16.mxu1 %v1143_v7  ;;  %v1311_v40 = vld [vmem:[#allocation3 + $0x6c8] sm:$0xff]  ;;  %v1310_v18 = vld [vmem:[#allocation3 + $0x6c0] sm:$0xff]  ;;  %v1120_v7 = vld [vmem:[#allocation3 + $0xd0] sm:$0xff] }
 0x458   :  { %3843 = vmatprep.subr.bf16.mxu0 %v1271_v8  ;;  %v1191_v31 = vld [vmem:[#allocation3 + $0x308] sm:$0xff]  ;;  %v1190_v27 = vld [vmem:[#allocation3 + $0x300] sm:$0xff] }
 0x459   :  { %v1319_v32 = vld [vmem:[#allocation3 + $0x708] sm:$0xff]  ;;  %v1318_v29 = vld [vmem:[#allocation3 + $0x700] sm:$0xff] }
 0x45a   :  { %3781 = vmatpush1.bf16.msra.mxu1 %v1142_v9  ;;  %v1199_v34 = vld [vmem:[#allocation3 + $0x348] sm:$0xff]  ;;  %v1198_v42 = vld [vmem:[#allocation3 + $0x340] sm:$0xff]  ;;  %v1129_v9 = vld [vmem:[#allocation3 + $0x118] sm:$0xff] }
 0x45b   :  { %3845 = vmatpush1.bf16.msra.mxu0 %v1270_v10  ;;  %3783 = vmatprep.subr.bf16.mxu1 %v1151_v13  ;;  %v1327_v35 = vld [vmem:[#allocation3 + $0x748] sm:$0xff]  ;;  %v1326_v43 = vld [vmem:[#allocation3 + $0x740] sm:$0xff]  ;;  %v1128_v13 = vld [vmem:[#allocation3 + $0x110] sm:$0xff] }
 0x45c   :  { %3847 = vmatprep.subr.bf16.mxu0 %v1279_v14  ;;  %v1207_v44 = vld [vmem:[#allocation3 + $0x388] sm:$0xff]  ;;  %v1206_v46 = vld [vmem:[#allocation3 + $0x380] sm:$0xff] }
 0x45d   :  { %v1335_v45 = vld [vmem:[#allocation3 + $0x788] sm:$0xff]  ;;  %v1334_v47 = vld [vmem:[#allocation3 + $0x780] sm:$0xff] }
 0x45e   :  { %3785 = vmatpush1.bf16.msra.mxu1 %v1150_v15  ;;  %v1215_v48 = vld [vmem:[#allocation3 + $0x3c8] sm:$0xff]  ;;  %v1214_v50 = vld [vmem:[#allocation3 + $0x3c0] sm:$0xff]  ;;  %v1137_v15 = vld [vmem:[#allocation3 + $0x158] sm:$0xff] }
 0x45f   :  { %3849 = vmatpush1.bf16.msra.mxu0 %v1278_v17  ;;  %3787 = vmatprep.subr.bf16.mxu1 %v1159_v19  ;;  %v1343_v49 = vld [vmem:[#allocation3 + $0x7c8] sm:$0xff]  ;;  %v1342_v33 = vld [vmem:[#allocation3 + $0x7c0] sm:$0xff]  ;;  %v1136_v19 = vld [vmem:[#allocation3 + $0x150] sm:$0xff] }
 0x460   :  { %3851 = vmatprep.subr.bf16.mxu0 %v1287_v20  ;;  %v1099_v54 = vld [vmem:[#allocation3 + $0x28] sm:$0xff]  ;;  %v1098_v56 = vld [vmem:[#allocation3 + $0x20] sm:$0xff] }
 0x461   :  { %v1107_v58 = vld [vmem:[#allocation3 + $0x68] sm:$0xff]  ;;  %v1106_v60 = vld [vmem:[#allocation3 + $0x60] sm:$0xff] }
 0x462   :  { %3789 = vmatpush1.bf16.msra.mxu1 %v1158_v21  ;;  %v1115_v62 = vld [vmem:[#allocation3 + $0xa8] sm:$0xff]  ;;  %v1114_v2 = vld [vmem:[#allocation3 + $0xa0] sm:$0xff]  ;;  %v1145_v21 = vld [vmem:[#allocation3 + $0x198] sm:$0xff] }
 0x463   :  { %3853 = vmatpush1.bf16.msra.mxu0 %v1286_v22  ;;  %3791 = vmatprep.subr.bf16.mxu1 %v1167_v23  ;;  %v1123_v6 = vld [vmem:[#allocation3 + $0xe8] sm:$0xff]  ;;  %v1122_v8 = vld [vmem:[#allocation3 + $0xe0] sm:$0xff]  ;;  %v1144_v23 = vld [vmem:[#allocation3 + $0x190] sm:$0xff] }
 0x464   :  { %3855 = vmatprep.subr.bf16.mxu0 %v1295_v24  ;;  %v1131_v10 = vld [vmem:[#allocation3 + $0x128] sm:$0xff]  ;;  %v1130_v14 = vld [vmem:[#allocation3 + $0x120] sm:$0xff] }
 0x465   :  { %v1139_v17 = vld [vmem:[#allocation3 + $0x168] sm:$0xff]  ;;  %v1138_v20 = vld [vmem:[#allocation3 + $0x160] sm:$0xff] }
 0x466   :  { %3793 = vmatpush1.bf16.msra.mxu1 %v1166_v25  ;;  %v1147_v22 = vld [vmem:[#allocation3 + $0x1a8] sm:$0xff]  ;;  %v1146_v24 = vld [vmem:[#allocation3 + $0x1a0] sm:$0xff]  ;;  %v1153_v25 = vld [vmem:[#allocation3 + $0x1d8] sm:$0xff] }
 0x467   :  { %3857 = vmatpush1.bf16.msra.mxu0 %v1294_v26  ;;  %3795 = vmatprep.subr.bf16.mxu1 %v1175_v51  ;;  %v1155_v26 = vld [vmem:[#allocation3 + $0x1e8] sm:$0xff]  ;;  %v1152_v51 = vld [vmem:[#allocation3 + $0x1d0] sm:$0xff] }
 0x468   :  { %3859 = vmatprep.subr.bf16.mxu0 %v1303_v28  ;;  %v1154_v28 = vld [vmem:[#allocation3 + $0x1e0] sm:$0xff] }
 0x46a   :  { %3797 = vmatpush1.bf16.msra.mxu1 %v1174_v52  ;;  %v1161_v52 = vld [vmem:[#allocation3 + $0x218] sm:$0xff] }
 0x46b   :  { %3861 = vmatpush1.bf16.msra.mxu0 %v1302_v30  ;;  %3799 = vmatprep.subr.bf16.mxu1 %v1183_v38  ;;  %v1163_v30 = vld [vmem:[#allocation3 + $0x228] sm:$0xff]  ;;  %v1160_v38 = vld [vmem:[#allocation3 + $0x210] sm:$0xff] }
 0x46c   :  { %3863 = vmatprep.subr.bf16.mxu0 %v1311_v40  ;;  %v1162_v40 = vld [vmem:[#allocation3 + $0x220] sm:$0xff] }
 0x46e   :  { %3801 = vmatpush1.bf16.msra.mxu1 %v1182_v16  ;;  %v1169_v16 = vld [vmem:[#allocation3 + $0x258] sm:$0xff] }
 0x46f   :  { %3865 = vmatpush1.bf16.msra.mxu0 %v1310_v18  ;;  %3803 = vmatprep.subr.bf16.mxu1 %v1191_v31  ;;  %v1171_v18 = vld [vmem:[#allocation3 + $0x268] sm:$0xff]  ;;  %v1168_v31 = vld [vmem:[#allocation3 + $0x250] sm:$0xff] }
 0x470   :  { %3867 = vmatprep.subr.bf16.mxu0 %v1319_v32  ;;  %v1170_v32 = vld [vmem:[#allocation3 + $0x260] sm:$0xff] }
 0x472   :  { %3805 = vmatpush1.bf16.msra.mxu1 %v1190_v27  ;;  %v1177_v27 = vld [vmem:[#allocation3 + $0x298] sm:$0xff] }
 0x473   :  { %3869 = vmatpush1.bf16.msra.mxu0 %v1318_v29  ;;  %3807 = vmatprep.subr.bf16.mxu1 %v1199_v34  ;;  %v1179_v29 = vld [vmem:[#allocation3 + $0x2a8] sm:$0xff]  ;;  %v1176_v34 = vld [vmem:[#allocation3 + $0x290] sm:$0xff] }
 0x474   :  { %3871 = vmatprep.subr.bf16.mxu0 %v1327_v35  ;;  %v1178_v35 = vld [vmem:[#allocation3 + $0x2a0] sm:$0xff] }
 0x476   :  { %3809 = vmatpush1.bf16.msra.mxu1 %v1198_v42  ;;  %v1185_v42 = vld [vmem:[#allocation3 + $0x2d8] sm:$0xff] }
 0x477   :  { %3873 = vmatpush1.bf16.msra.mxu0 %v1326_v43  ;;  %3811 = vmatprep.subr.bf16.mxu1 %v1207_v44  ;;  %v1187_v43 = vld [vmem:[#allocation3 + $0x2e8] sm:$0xff]  ;;  %v1184_v44 = vld [vmem:[#allocation3 + $0x2d0] sm:$0xff] }
 0x478   :  { %3875 = vmatprep.subr.bf16.mxu0 %v1335_v45  ;;  %v1186_v45 = vld [vmem:[#allocation3 + $0x2e0] sm:$0xff] }
 0x47a   :  { %3813 = vmatpush1.bf16.msra.mxu1 %v1206_v46  ;;  %v1193_v46 = vld [vmem:[#allocation3 + $0x318] sm:$0xff] }
 0x47b   :  { %3877 = vmatpush1.bf16.msra.mxu0 %v1334_v47  ;;  %3815 = vmatprep.subr.bf16.mxu1 %v1215_v48  ;;  %v1195_v47 = vld [vmem:[#allocation3 + $0x328] sm:$0xff]  ;;  %v1192_v48 = vld [vmem:[#allocation3 + $0x310] sm:$0xff] }
 0x47c   :  { %3879 = vmatprep.subr.bf16.mxu0 %v1343_v49  ;;  %v1194_v49 = vld [vmem:[#allocation3 + $0x320] sm:$0xff] }
 0x47e   :  { %3817 = vmatpush1.bf16.msra.mxu1 %v1214_v50  ;;  %v1201_v50 = vld [vmem:[#allocation3 + $0x358] sm:$0xff] }
 0x47f   :  { %3881 = vmatpush1.bf16.msra.mxu0 %v1342_v33  ;;  %3883 = vmatprep.subr.bf16.mxu1 %v1097_v53  ;;  %v1203_v33 = vld [vmem:[#allocation3 + $0x368] sm:$0xff]  ;;  %v1200_v53 = vld [vmem:[#allocation3 + $0x350] sm:$0xff] }
 0x480   :  { %4011 = vmatprep.subr.bf16.mxu0 %v1099_v54  ;;  %v1202_v54 = vld [vmem:[#allocation3 + $0x360] sm:$0xff] }
 0x481   :  { %1927 = vmatmul.mubr.f32.vlgmr.msra.gmra.mrb[6].mxu1 %v5115_v36 }
 0x482   :  { %1998 = vmatmul.mubr.f32.vlgmr.msra.gmra.mrb[2].mxu0 %v5119_v39  ;;  %3885 = vmatpush1.bf16.msra.mxu1 %v1096_v55  ;;  %v1209_v55 = vld [vmem:[#allocation3 + $0x398] sm:$0xff] }
 0x483   :  { %4013 = vmatpush1.bf16.msra.mxu0 %v1098_v56  ;;  %3887 = vmatprep.subr.bf16.mxu1 %v1105_v57  ;;  %v1211_v56 = vld [vmem:[#allocation3 + $0x3a8] sm:$0xff]  ;;  %v1208_v57 = vld [vmem:[#allocation3 + $0x390] sm:$0xff] }
 0x484   :  { %4015 = vmatprep.subr.bf16.mxu0 %v1107_v58  ;;  %2068 = vmatprep.mubr.f32.mxu1 %v5117_v37  ;;  %v1210_v58 = vld [vmem:[#allocation3 + $0x3a0] sm:$0xff] }
 0x485   :  { %2210 = vmatprep.mubr.f32.mxu0 %v5117_v37 }
 0x486   :  { %3889 = vmatpush1.bf16.msra.mxu1 %v1104_v59  ;;  %v1217_v59 = vld [vmem:[#allocation3 + $0x3d8] sm:$0xff] }
 0x487   :  { %4017 = vmatpush1.bf16.msra.mxu0 %v1106_v60  ;;  %3891 = vmatprep.subr.bf16.mxu1 %v1113_v61  ;;  %v1219_v60 = vld [vmem:[#allocation3 + $0x3e8] sm:$0xff]  ;;  %v1216_v61 = vld [vmem:[#allocation3 + $0x3d0] sm:$0xff] }
 0x488   :  { %4019 = vmatprep.subr.bf16.mxu0 %v1115_v62  ;;  %v1218_v62 = vld [vmem:[#allocation3 + $0x3e0] sm:$0xff] }
 0x48a   :  { %3893 = vmatpush1.bf16.msra.mxu1 %v1112_v63  ;;  %v1225_v63 = vld [vmem:[#allocation3 + $0x418] sm:$0xff] }
 0x48b   :  { %4021 = vmatpush1.bf16.msra.mxu0 %v1114_v2  ;;  %3895 = vmatprep.subr.bf16.mxu1 %v1121_v4  ;;  %v1227_v2 = vld [vmem:[#allocation3 + $0x428] sm:$0xff]  ;;  %v1224_v4 = vld [vmem:[#allocation3 + $0x410] sm:$0xff] }
 0x48c   :  { %4023 = vmatprep.subr.bf16.mxu0 %v1123_v6  ;;  %v1226_v6 = vld [vmem:[#allocation3 + $0x420] sm:$0xff] }
 0x48e   :  { %3897 = vmatpush1.bf16.msra.mxu1 %v1120_v7  ;;  %v1233_v7 = vld [vmem:[#allocation3 + $0x458] sm:$0xff] }
 0x48f   :  { %4025 = vmatpush1.bf16.msra.mxu0 %v1122_v8  ;;  %3899 = vmatprep.subr.bf16.mxu1 %v1129_v9  ;;  %v1235_v8 = vld [vmem:[#allocation3 + $0x468] sm:$0xff]  ;;  %v1232_v9 = vld [vmem:[#allocation3 + $0x450] sm:$0xff] }
 0x490   :  { %4027 = vmatprep.subr.bf16.mxu0 %v1131_v10  ;;  %v1234_v10 = vld [vmem:[#allocation3 + $0x460] sm:$0xff] }
 0x492   :  { %3901 = vmatpush1.bf16.msra.mxu1 %v1128_v13  ;;  %v1241_v13 = vld [vmem:[#allocation3 + $0x498] sm:$0xff] }
 0x493   :  { %4029 = vmatpush1.bf16.msra.mxu0 %v1130_v14  ;;  %3903 = vmatprep.subr.bf16.mxu1 %v1137_v15  ;;  %v1243_v14 = vld [vmem:[#allocation3 + $0x4a8] sm:$0xff]  ;;  %v1240_v15 = vld [vmem:[#allocation3 + $0x490] sm:$0xff] }
 0x494   :  { %4031 = vmatprep.subr.bf16.mxu0 %v1139_v17  ;;  %v1242_v17 = vld [vmem:[#allocation3 + $0x4a0] sm:$0xff] }
 0x496   :  { %3905 = vmatpush1.bf16.msra.mxu1 %v1136_v19  ;;  %v1249_v19 = vld [vmem:[#allocation3 + $0x4d8] sm:$0xff] }
 0x497   :  { %4033 = vmatpush1.bf16.msra.mxu0 %v1138_v20  ;;  %3907 = vmatprep.subr.bf16.mxu1 %v1145_v21  ;;  %v1251_v20 = vld [vmem:[#allocation3 + $0x4e8] sm:$0xff]  ;;  %v1248_v21 = vld [vmem:[#allocation3 + $0x4d0] sm:$0xff] }
 0x498   :  { %4035 = vmatprep.subr.bf16.mxu0 %v1147_v22  ;;  %v1250_v22 = vld [vmem:[#allocation3 + $0x4e0] sm:$0xff] }
 0x49a   :  { %3909 = vmatpush1.bf16.msra.mxu1 %v1144_v23  ;;  %v1257_v23 = vld [vmem:[#allocation3 + $0x518] sm:$0xff] }
 0x49b   :  { %4037 = vmatpush1.bf16.msra.mxu0 %v1146_v24  ;;  %3911 = vmatprep.subr.bf16.mxu1 %v1153_v25  ;;  %v1259_v24 = vld [vmem:[#allocation3 + $0x528] sm:$0xff]  ;;  %v1256_v25 = vld [vmem:[#allocation3 + $0x510] sm:$0xff] }
 0x49c   :  { %4039 = vmatprep.subr.bf16.mxu0 %v1155_v26  ;;  %v1258_v26 = vld [vmem:[#allocation3 + $0x520] sm:$0xff] }
 0x49e   :  { %3913 = vmatpush1.bf16.msra.mxu1 %v1152_v51  ;;  %v1265_v51 = vld [vmem:[#allocation3 + $0x558] sm:$0xff] }
 0x49f   :  { %4041 = vmatpush1.bf16.msra.mxu0 %v1154_v28  ;;  %3915 = vmatprep.subr.bf16.mxu1 %v1161_v52  ;;  %v1267_v28 = vld [vmem:[#allocation3 + $0x568] sm:$0xff]  ;;  %v1264_v52 = vld [vmem:[#allocation3 + $0x550] sm:$0xff] }
 0x4a0   :  { %4043 = vmatprep.subr.bf16.mxu0 %v1163_v30  ;;  %v1266_v30 = vld [vmem:[#allocation3 + $0x560] sm:$0xff] }
 0x4a2   :  { %3917 = vmatpush1.bf16.msra.mxu1 %v1160_v38  ;;  %v1273_v38 = vld [vmem:[#allocation3 + $0x598] sm:$0xff] }
 0x4a3   :  { %4045 = vmatpush1.bf16.msra.mxu0 %v1162_v40  ;;  %3919 = vmatprep.subr.bf16.mxu1 %v1169_v16  ;;  %v1275_v40 = vld [vmem:[#allocation3 + $0x5a8] sm:$0xff]  ;;  %v1272_v16 = vld [vmem:[#allocation3 + $0x590] sm:$0xff] }
 0x4a4   :  { %4047 = vmatprep.subr.bf16.mxu0 %v1171_v18  ;;  %v1274_v18 = vld [vmem:[#allocation3 + $0x5a0] sm:$0xff] }
 0x4a6   :  { %3921 = vmatpush1.bf16.msra.mxu1 %v1168_v31  ;;  %v1281_v31 = vld [vmem:[#allocation3 + $0x5d8] sm:$0xff] }
 0x4a7   :  { %4049 = vmatpush1.bf16.msra.mxu0 %v1170_v32  ;;  %3923 = vmatprep.subr.bf16.mxu1 %v1177_v27  ;;  %v1283_v32 = vld [vmem:[#allocation3 + $0x5e8] sm:$0xff]  ;;  %v1280_v27 = vld [vmem:[#allocation3 + $0x5d0] sm:$0xff] }
 0x4a8   :  { %4051 = vmatprep.subr.bf16.mxu0 %v1179_v29  ;;  %v1282_v29 = vld [vmem:[#allocation3 + $0x5e0] sm:$0xff] }
 0x4aa   :  { %3925 = vmatpush1.bf16.msra.mxu1 %v1176_v34  ;;  %v1289_v34 = vld [vmem:[#allocation3 + $0x618] sm:$0xff] }
 0x4ab   :  { %4053 = vmatpush1.bf16.msra.mxu0 %v1178_v35  ;;  %3927 = vmatprep.subr.bf16.mxu1 %v1185_v42  ;;  %v1291_v35 = vld [vmem:[#allocation3 + $0x628] sm:$0xff]  ;;  %v1288_v42 = vld [vmem:[#allocation3 + $0x610] sm:$0xff] }
 0x4ac   :  { %4055 = vmatprep.subr.bf16.mxu0 %v1187_v43  ;;  %v1290_v43 = vld [vmem:[#allocation3 + $0x620] sm:$0xff] }
 0x4ae   :  { %3929 = vmatpush1.bf16.msra.mxu1 %v1184_v44  ;;  %v1297_v44 = vld [vmem:[#allocation3 + $0x658] sm:$0xff] }
 0x4af   :  { %4057 = vmatpush1.bf16.msra.mxu0 %v1186_v45  ;;  %3931 = vmatprep.subr.bf16.mxu1 %v1193_v46  ;;  %v1299_v45 = vld [vmem:[#allocation3 + $0x668] sm:$0xff]  ;;  %v1296_v46 = vld [vmem:[#allocation3 + $0x650] sm:$0xff] }
 0x4b0   :  { %4059 = vmatprep.subr.bf16.mxu0 %v1195_v47  ;;  %v1298_v47 = vld [vmem:[#allocation3 + $0x660] sm:$0xff] }
 0x4b2   :  { %3933 = vmatpush1.bf16.msra.mxu1 %v1192_v48  ;;  %v1305_v48 = vld [vmem:[#allocation3 + $0x698] sm:$0xff] }
 0x4b3   :  { %4061 = vmatpush1.bf16.msra.mxu0 %v1194_v49  ;;  %3935 = vmatprep.subr.bf16.mxu1 %v1201_v50  ;;  %v1307_v49 = vld [vmem:[#allocation3 + $0x6a8] sm:$0xff]  ;;  %v1304_v50 = vld [vmem:[#allocation3 + $0x690] sm:$0xff] }
 0x4b4   :  { %4063 = vmatprep.subr.bf16.mxu0 %v1203_v33  ;;  %v1306_v33 = vld [vmem:[#allocation3 + $0x6a0] sm:$0xff] }
 0x4b6   :  { %3937 = vmatpush1.bf16.msra.mxu1 %v1200_v53  ;;  %v1313_v53 = vld [vmem:[#allocation3 + $0x6d8] sm:$0xff] }
 0x4b7   :  { %4065 = vmatpush1.bf16.msra.mxu0 %v1202_v54  ;;  %3939 = vmatprep.subr.bf16.mxu1 %v1209_v55  ;;  %v1315_v54 = vld [vmem:[#allocation3 + $0x6e8] sm:$0xff]  ;;  %v1312_v55 = vld [vmem:[#allocation3 + $0x6d0] sm:$0xff] }
 0x4b8   :  { %4067 = vmatprep.subr.bf16.mxu0 %v1211_v56  ;;  %v1314_v56 = vld [vmem:[#allocation3 + $0x6e0] sm:$0xff] }
 0x4ba   :  { %3941 = vmatpush1.bf16.msra.mxu1 %v1208_v57  ;;  %v1321_v57 = vld [vmem:[#allocation3 + $0x718] sm:$0xff] }
 0x4bb   :  { %4069 = vmatpush1.bf16.msra.mxu0 %v1210_v58  ;;  %3943 = vmatprep.subr.bf16.mxu1 %v1217_v59  ;;  %v1323_v58 = vld [vmem:[#allocation3 + $0x728] sm:$0xff]  ;;  %v1320_v59 = vld [vmem:[#allocation3 + $0x710] sm:$0xff] }
 0x4bc   :  { %4071 = vmatprep.subr.bf16.mxu0 %v1219_v60  ;;  %v1322_v60 = vld [vmem:[#allocation3 + $0x720] sm:$0xff] }
 0x4be   :  { %3945 = vmatpush1.bf16.msra.mxu1 %v1216_v61  ;;  %v1329_v61 = vld [vmem:[#allocation3 + $0x758] sm:$0xff] }
 0x4bf   :  { %4073 = vmatpush1.bf16.msra.mxu0 %v1218_v62  ;;  %3947 = vmatprep.subr.bf16.mxu1 %v1225_v63  ;;  %v1331_v62 = vld [vmem:[#allocation3 + $0x768] sm:$0xff]  ;;  %v1328_v63 = vld [vmem:[#allocation3 + $0x750] sm:$0xff] }
 0x4c0   :  { %4075 = vmatprep.subr.bf16.mxu0 %v1227_v2  ;;  %v1330_v2 = vld [vmem:[#allocation3 + $0x760] sm:$0xff] }
 0x4c1   :  { %2069 = vmatmul.mubr.f32.vlgmr.msra.gmra.mrb[8].mxu1 %v5115_v36 }
 0x4c2   :  { %2211 = vmatmul.mubr.f32.vlgmr.msra.gmra.mrb[4].mxu0 %v5115_v36  ;;  %3949 = vmatpush1.bf16.msra.mxu1 %v1224_v4  ;;  %v1337_v4 = vld [vmem:[#allocation3 + $0x798] sm:$0xff] }
 0x4c3   :  { %4077 = vmatpush1.bf16.msra.mxu0 %v1226_v6  ;;  %3951 = vmatprep.subr.bf16.mxu1 %v1233_v7  ;;  %v1339_v6 = vld [vmem:[#allocation3 + $0x7a8] sm:$0xff]  ;;  %v1336_v7 = vld [vmem:[#allocation3 + $0x790] sm:$0xff] }
 0x4c4   :  { %4079 = vmatprep.subr.bf16.mxu0 %v1235_v8  ;;  %2139 = vmatprep.mubr.f32.mxu1 %v5121_v41  ;;  %v1338_v8 = vld [vmem:[#allocation3 + $0x7a0] sm:$0xff] }
 0x4c5   :  { %2281 = vmatprep.mubr.f32.mxu0 %v5121_v41 }
 0x4c6   :  { %3953 = vmatpush1.bf16.msra.mxu1 %v1232_v9  ;;  %v1345_v9 = vld [vmem:[#allocation3 + $0x7d8] sm:$0xff] }
 0x4c7   :  { %4081 = vmatpush1.bf16.msra.mxu0 %v1234_v10  ;;  %3955 = vmatprep.subr.bf16.mxu1 %v1241_v13  ;;  %v1347_v10 = vld [vmem:[#allocation3 + $0x7e8] sm:$0xff]  ;;  %v1344_v13 = vld [vmem:[#allocation3 + $0x7d0] sm:$0xff] }
 0x4c8   :  { %4083 = vmatprep.subr.bf16.mxu0 %v1243_v14  ;;  %v1346_v14 = vld [vmem:[#allocation3 + $0x7e0] sm:$0xff] }
 0x4ca   :  { %3957 = vmatpush1.bf16.msra.mxu1 %v1240_v15  ;;  %v1101_v15 = vld [vmem:[#allocation3 + $0x38] sm:$0xff] }
 0x4cb   :  { %4085 = vmatpush1.bf16.msra.mxu0 %v1242_v17  ;;  %3959 = vmatprep.subr.bf16.mxu1 %v1249_v19  ;;  %v1100_v17 = vld [vmem:[#allocation3 + $0x30] sm:$0xff]  ;;  %v1109_v19 = vld [vmem:[#allocation3 + $0x78] sm:$0xff] }
 0x4cc   :  { %4087 = vmatprep.subr.bf16.mxu0 %v1251_v20  ;;  %v1108_v20 = vld [vmem:[#allocation3 + $0x70] sm:$0xff] }
 0x4ce   :  { %3961 = vmatpush1.bf16.msra.mxu1 %v1248_v21  ;;  %v1117_v21 = vld [vmem:[#allocation3 + $0xb8] sm:$0xff] }
 0x4cf   :  { %4089 = vmatpush1.bf16.msra.mxu0 %v1250_v22  ;;  %3963 = vmatprep.subr.bf16.mxu1 %v1257_v23  ;;  %v1116_v22 = vld [vmem:[#allocation3 + $0xb0] sm:$0xff]  ;;  %v1125_v23 = vld [vmem:[#allocation3 + $0xf8] sm:$0xff] }
 0x4d0   :  { %4091 = vmatprep.subr.bf16.mxu0 %v1259_v24  ;;  %v1124_v24 = vld [vmem:[#allocation3 + $0xf0] sm:$0xff] }
 0x4d2   :  { %3965 = vmatpush1.bf16.msra.mxu1 %v1256_v25  ;;  %v1133_v25 = vld [vmem:[#allocation3 + $0x138] sm:$0xff] }
 0x4d3   :  { %4093 = vmatpush1.bf16.msra.mxu0 %v1258_v26  ;;  %3967 = vmatprep.subr.bf16.mxu1 %v1265_v51  ;;  %v1132_v26 = vld [vmem:[#allocation3 + $0x130] sm:$0xff]  ;;  %v1141_v51 = vld [vmem:[#allocation3 + $0x178] sm:$0xff] }
 0x4d4   :  { %4095 = vmatprep.subr.bf16.mxu0 %v1267_v28  ;;  %v1140_v28 = vld [vmem:[#allocation3 + $0x170] sm:$0xff] }
 0x4d6   :  { %3969 = vmatpush1.bf16.msra.mxu1 %v1264_v52  ;;  %v1149_v52 = vld [vmem:[#allocation3 + $0x1b8] sm:$0xff] }
 0x4d7   :  { %4097 = vmatpush1.bf16.msra.mxu0 %v1266_v30  ;;  %3971 = vmatprep.subr.bf16.mxu1 %v1273_v38  ;;  %v1157_v30 = vld [vmem:[#allocation3 + $0x1f8] sm:$0xff]  ;;  %v1156_v38 = vld [vmem:[#allocation3 + $0x1f0] sm:$0xff] }
 0x4d8   :  { %4099 = vmatprep.subr.bf16.mxu0 %v1275_v40  ;;  %v1165_v40 = vld [vmem:[#allocation3 + $0x238] sm:$0xff] }
 0x4da   :  { %3973 = vmatpush1.bf16.msra.mxu1 %v1272_v16  ;;  %v1164_v16 = vld [vmem:[#allocation3 + $0x230] sm:$0xff] }
 0x4db   :  { %4101 = vmatpush1.bf16.msra.mxu0 %v1274_v18  ;;  %3975 = vmatprep.subr.bf16.mxu1 %v1281_v31  ;;  %v1173_v18 = vld [vmem:[#allocation3 + $0x278] sm:$0xff]  ;;  %v1172_v31 = vld [vmem:[#allocation3 + $0x270] sm:$0xff] }
 0x4dc   :  { %4103 = vmatprep.subr.bf16.mxu0 %v1283_v32  ;;  %v1181_v32 = vld [vmem:[#allocation3 + $0x2b8] sm:$0xff] }
 0x4de   :  { %3977 = vmatpush1.bf16.msra.mxu1 %v1280_v27  ;;  %v1180_v27 = vld [vmem:[#allocation3 + $0x2b0] sm:$0xff] }
 0x4df   :  { %4105 = vmatpush1.bf16.msra.mxu0 %v1282_v29  ;;  %3979 = vmatprep.subr.bf16.mxu1 %v1289_v34  ;;  %v1189_v29 = vld [vmem:[#allocation3 + $0x2f8] sm:$0xff]  ;;  %v1188_v34 = vld [vmem:[#allocation3 + $0x2f0] sm:$0xff] }
 0x4e0   :  { %4107 = vmatprep.subr.bf16.mxu0 %v1291_v35  ;;  %v1197_v35 = vld [vmem:[#allocation3 + $0x338] sm:$0xff] }
 0x4e2   :  { %3981 = vmatpush1.bf16.msra.mxu1 %v1288_v42  ;;  %v1196_v42 = vld [vmem:[#allocation3 + $0x330] sm:$0xff] }
 0x4e3   :  { %4109 = vmatpush1.bf16.msra.mxu0 %v1290_v43  ;;  %3983 = vmatprep.subr.bf16.mxu1 %v1297_v44  ;;  %v1205_v43 = vld [vmem:[#allocation3 + $0x378] sm:$0xff]  ;;  %v1204_v44 = vld [vmem:[#allocation3 + $0x370] sm:$0xff] }
 0x4e4   :  { %4111 = vmatprep.subr.bf16.mxu0 %v1299_v45  ;;  %v1213_v45 = vld [vmem:[#allocation3 + $0x3b8] sm:$0xff] }
 0x4e6   :  { %3985 = vmatpush1.bf16.msra.mxu1 %v1296_v46  ;;  %v1212_v46 = vld [vmem:[#allocation3 + $0x3b0] sm:$0xff] }
 0x4e7   :  { %4113 = vmatpush1.bf16.msra.mxu0 %v1298_v47  ;;  %3987 = vmatprep.subr.bf16.mxu1 %v1305_v48  ;;  %v1221_v47 = vld [vmem:[#allocation3 + $0x3f8] sm:$0xff]  ;;  %v1220_v48 = vld [vmem:[#allocation3 + $0x3f0] sm:$0xff] }
 0x4e8   :  { %4115 = vmatprep.subr.bf16.mxu0 %v1307_v49  ;;  %v1229_v49 = vld [vmem:[#allocation3 + $0x438] sm:$0xff] }
 0x4ea   :  { %3989 = vmatpush1.bf16.msra.mxu1 %v1304_v50  ;;  %v1228_v50 = vld [vmem:[#allocation3 + $0x430] sm:$0xff] }
 0x4eb   :  { %4117 = vmatpush1.bf16.msra.mxu0 %v1306_v33  ;;  %3991 = vmatprep.subr.bf16.mxu1 %v1313_v53  ;;  %v1237_v33 = vld [vmem:[#allocation3 + $0x478] sm:$0xff]  ;;  %v1236_v53 = vld [vmem:[#allocation3 + $0x470] sm:$0xff] }
 0x4ec   :  { %4119 = vmatprep.subr.bf16.mxu0 %v1315_v54  ;;  %v1245_v54 = vld [vmem:[#allocation3 + $0x4b8] sm:$0xff] }
 0x4ee   :  { %3993 = vmatpush1.bf16.msra.mxu1 %v1312_v55  ;;  %v1244_v55 = vld [vmem:[#allocation3 + $0x4b0] sm:$0xff] }
 0x4ef   :  { %4121 = vmatpush1.bf16.msra.mxu0 %v1314_v56  ;;  %3995 = vmatprep.subr.bf16.mxu1 %v1321_v57  ;;  %v1253_v56 = vld [vmem:[#allocation3 + $0x4f8] sm:$0xff]  ;;  %v1252_v57 = vld [vmem:[#allocation3 + $0x4f0] sm:$0xff] }
 0x4f0   :  { %4123 = vmatprep.subr.bf16.mxu0 %v1323_v58  ;;  %v1261_v58 = vld [vmem:[#allocation3 + $0x538] sm:$0xff] }
 0x4f2   :  { %3997 = vmatpush1.bf16.msra.mxu1 %v1320_v59  ;;  %v1260_v59 = vld [vmem:[#allocation3 + $0x530] sm:$0xff] }
 0x4f3   :  { %4125 = vmatpush1.bf16.msra.mxu0 %v1322_v60  ;;  %3999 = vmatprep.subr.bf16.mxu1 %v1329_v61  ;;  %v1269_v60 = vld [vmem:[#allocation3 + $0x578] sm:$0xff] }
 0x4f4   :  { %4127 = vmatprep.subr.bf16.mxu0 %v1331_v62  ;;  %v1277_v62 = vld [vmem:[#allocation3 + $0x5b8] sm:$0xff] }
 0x4f6   :  { %4001 = vmatpush1.bf16.msra.mxu1 %v1328_v63 }
 0x4f7   :  { %4129 = vmatpush1.bf16.msra.mxu0 %v1330_v2  ;;  %4003 = vmatprep.subr.bf16.mxu1 %v1337_v4 }
 0x4f8   :  { %4131 = vmatprep.subr.bf16.mxu0 %v1339_v6 }
 0x4fa   :  { %4005 = vmatpush1.bf16.msra.mxu1 %v1336_v7  ;;  %v1276_v7 = vld [vmem:[#allocation3 + $0x5b0] sm:$0xff] }
 0x4fb   :  { %4133 = vmatpush1.bf16.msra.mxu0 %v1338_v8  ;;  %4007 = vmatprep.subr.bf16.mxu1 %v1345_v9  ;;  %v1285_v8 = vld [vmem:[#allocation3 + $0x5f8] sm:$0xff]  ;;  %v1284_v9 = vld [vmem:[#allocation3 + $0x5f0] sm:$0xff] }
 0x4fc   :  { %4135 = vmatprep.subr.bf16.mxu0 %v1347_v10  ;;  %v1293_v10 = vld [vmem:[#allocation3 + $0x638] sm:$0xff] }
 0x4fe   :  { %4009 = vmatpush1.bf16.msra.mxu1 %v1344_v13  ;;  %v1292_v13 = vld [vmem:[#allocation3 + $0x630] sm:$0xff] }
 0x4ff   :  { %4137 = vmatpush1.bf16.msra.mxu0 %v1346_v14  ;;  %4139 = vmatprep.subr.bf16.mxu1 %v1101_v15  ;;  %v1301_v14 = vld [vmem:[#allocation3 + $0x678] sm:$0xff]  ;;  %v1300_v15 = vld [vmem:[#allocation3 + $0x670] sm:$0xff] }
 0x501   :  { %2140 = vmatmul.mubr.f32.vlgmr.msra.gmra.mrb[8].mxu1 %v5119_v39 }
 0x502   :  { %2282 = vmatmul.mubr.f32.vlgmr.msra.gmra.mrb[4].mxu0 %v5119_v39  ;;  %4141 = vmatpush1.bf16.msra.mxu1 %v1100_v17  ;;  %v1309_v17 = vld [vmem:[#allocation3 + $0x6b8] sm:$0xff] }
 0x503   :  { %2352 = vmatprep.mubr.f32.mxu1 %v5117_v37  ;;  %4143 = vmatprep.subr.bf16.mxu1 %v1109_v19  ;;  %v1148_v37 = vld [vmem:[#allocation3 + $0x1b0] sm:$0xff] }
 0x504   :  { %v1308_v19 = vld [vmem:[#allocation3 + $0x6b0] sm:$0xff] }
 0x506   :  { %4145 = vmatpush1.bf16.msra.mxu1 %v1108_v20  ;;  %v1317_v20 = vld [vmem:[#allocation3 + $0x6f8] sm:$0xff] }
 0x507   :  { %4147 = vmatprep.subr.bf16.mxu1 %v1117_v21  ;;  %v1316_v21 = vld [vmem:[#allocation3 + $0x6f0] sm:$0xff] }
 0x50a   :  { %4149 = vmatpush1.bf16.msra.mxu1 %v1116_v22  ;;  %v1325_v22 = vld [vmem:[#allocation3 + $0x738] sm:$0xff] }
 0x50b   :  { %4151 = vmatprep.subr.bf16.mxu1 %v1125_v23  ;;  %v1324_v23 = vld [vmem:[#allocation3 + $0x730] sm:$0xff] }
 0x50e   :  { %4153 = vmatpush1.bf16.msra.mxu1 %v1124_v24  ;;  %v1333_v24 = vld [vmem:[#allocation3 + $0x778] sm:$0xff] }
 0x50f   :  { %4155 = vmatprep.subr.bf16.mxu1 %v1133_v25  ;;  %v1332_v25 = vld [vmem:[#allocation3 + $0x770] sm:$0xff] }
 0x512   :  { %4157 = vmatpush1.bf16.msra.mxu1 %v1132_v26  ;;  %v1341_v26 = vld [vmem:[#allocation3 + $0x7b8] sm:$0xff] }
 0x513   :  { %4159 = vmatprep.subr.bf16.mxu1 %v1141_v51  ;;  %v1340_v51 = vld [vmem:[#allocation3 + $0x7b0] sm:$0xff] }
 0x516   :  { %4161 = vmatpush1.bf16.msra.mxu1 %v1140_v28  ;;  %v1349_v28 = vld [vmem:[#allocation3 + $0x7f8] sm:$0xff] }
 0x517   :  { %4163 = vmatprep.subr.bf16.mxu1 %v1149_v52  ;;  %v1348_v52 = vld [vmem:[#allocation3 + $0x7f0] sm:$0xff] }
 0x51a   :  { %4165 = vmatpush1.bf16.msra.mxu1 %v1148_v37 }
 0x51b   :  { %4167 = vmatprep.subr.bf16.mxu1 %v1157_v30 }
 0x51e   :  { %4169 = vmatpush1.bf16.msra.mxu1 %v1156_v38 }
 0x51f   :  { %4171 = vmatprep.subr.bf16.mxu1 %v1165_v40 }
 0x522   :  { %4173 = vmatpush1.bf16.msra.mxu1 %v1164_v16 }
 0x523   :  { %4175 = vmatprep.subr.bf16.mxu1 %v1173_v18 }
 0x526   :  { %4177 = vmatpush1.bf16.msra.mxu1 %v1172_v31 }
 0x527   :  { %4179 = vmatprep.subr.bf16.mxu1 %v1181_v32 }
 0x52a   :  { %4181 = vmatpush1.bf16.msra.mxu1 %v1180_v27 }
 0x52b   :  { %4183 = vmatprep.subr.bf16.mxu1 %v1189_v29 }
 0x52e   :  { %4185 = vmatpush1.bf16.msra.mxu1 %v1188_v34 }
 0x52f   :  { %4187 = vmatprep.subr.bf16.mxu1 %v1197_v35 }
 0x532   :  { %4189 = vmatpush1.bf16.msra.mxu1 %v1196_v42 }
 0x533   :  { %4191 = vmatprep.subr.bf16.mxu1 %v1205_v43 }
 0x536   :  { %4193 = vmatpush1.bf16.msra.mxu1 %v1204_v44 }
 0x537   :  { %4195 = vmatprep.subr.bf16.mxu1 %v1213_v45 }
 0x53a   :  { %4197 = vmatpush1.bf16.msra.mxu1 %v1212_v46 }
 0x53b   :  { %4199 = vmatprep.subr.bf16.mxu1 %v1221_v47 }
 0x53e   :  { %4201 = vmatpush1.bf16.msra.mxu1 %v1220_v48 }
 0x53f   :  { %4203 = vmatprep.subr.bf16.mxu1 %v1229_v49 }
 0x541   :  { %2353 = vmatmul.mubr.f32.vlgmr.msra.gmra.mrb[10].mxu1 %v5115_v36  ;;  %v1268_v36 = vld [vmem:[#allocation3 + $0x570] sm:$0xff] }
 0x542   :  { %4205 = vmatpush1.bf16.msra.mxu1 %v1228_v50  ;;  %2423 = vmatprep.mubr.f32.mxu1 %v5121_v41 }
 0x543   :  { %4207 = vmatprep.subr.bf16.mxu1 %v1237_v33 }
 0x546   :  { %4209 = vmatpush1.bf16.msra.mxu1 %v1236_v53 }
 0x547   :  { %4211 = vmatprep.subr.bf16.mxu1 %v1245_v54 }
 0x54a   :  { %4213 = vmatpush1.bf16.msra.mxu1 %v1244_v55 }
 0x54b   :  { %4215 = vmatprep.subr.bf16.mxu1 %v1253_v56 }
 0x54e   :  { %4217 = vmatpush1.bf16.msra.mxu1 %v1252_v57 }
 0x54f   :  { %4219 = vmatprep.subr.bf16.mxu1 %v1261_v58 }
 0x552   :  { %4221 = vmatpush1.bf16.msra.mxu1 %v1260_v59 }
 0x553   :  { %4223 = vmatprep.subr.bf16.mxu1 %v1269_v60 }
 0x554   :  { %v1928_v61 = vpop.f32.mrb[6].mxu1 }
 0x555   :  { %v1999_v41 = vpop.f32.mrb[2].mxu0  ;;  %v1930_v2 = vpop.f32.mrb[7].mxu1 }
 0x556   :  { %v5138_v63 = vadd.f32 %v1999_v41, %v1928_v61  ;;  %v2001_v4 = vpop.f32.mrb[3].mxu0  ;;  %4225 = vmatpush1.bf16.msra.mxu1 %v1268_v36 }
 0x557   :  { %v5140_v6 = vadd.f32 %v2001_v4, %v1930_v2  ;;  %4227 = vmatprep.subr.bf16.mxu1 %v1277_v62 }
 0x55a   :  { %4229 = vmatpush1.bf16.msra.mxu1 %v1276_v7 }
 0x55b   :  { %4231 = vmatprep.subr.bf16.mxu1 %v1285_v8 }
 0x55e   :  { %4233 = vmatpush1.bf16.msra.mxu1 %v1284_v9 }
 0x55f   :  { %4235 = vmatprep.subr.bf16.mxu1 %v1293_v10 }
 0x562   :  { %4237 = vmatpush1.bf16.msra.mxu1 %v1292_v13 }
 0x563   :  { %4239 = vmatprep.subr.bf16.mxu1 %v1301_v14 }
 0x566   :  { %4241 = vmatpush1.bf16.msra.mxu1 %v1300_v15 }
 0x567   :  { %4243 = vmatprep.subr.bf16.mxu1 %v1309_v17 }
 0x56a   :  { %4245 = vmatpush1.bf16.msra.mxu1 %v1308_v19 }
 0x56b   :  { %4247 = vmatprep.subr.bf16.mxu1 %v1317_v20 }
 0x56e   :  { %4249 = vmatpush1.bf16.msra.mxu1 %v1316_v21 }
 0x56f   :  { %4251 = vmatprep.subr.bf16.mxu1 %v1325_v22 }
 0x572   :  { %4253 = vmatpush1.bf16.msra.mxu1 %v1324_v23 }
 0x573   :  { %4255 = vmatprep.subr.bf16.mxu1 %v1333_v24 }
 0x576   :  { %4257 = vmatpush1.bf16.msra.mxu1 %v1332_v25 }
 0x577   :  { %4259 = vmatprep.subr.bf16.mxu1 %v1341_v26 }
 0x57a   :  { %4261 = vmatpush1.bf16.msra.mxu1 %v1340_v51 }
 0x57b   :  { %4263 = vmatprep.subr.bf16.mxu1 %v1349_v28 }
 0x57e   :  { %4265 = vmatpush1.bf16.msra.mxu1 %v1348_v52 }
 0x581   :  { %2424 = vmatmul.mubr.f32.vlgmr.msra.gmra.mrb[10].mxu1 %v5119_v39 }
 0x5d4   :  { %v5143_v37 = vpop.f32.mrb[8].mxu1 }
 0x5d5   :  { %v5145_v30 = vpop.f32.mrb[4].mxu0  ;;  %v2442_v38 = vrot.slane %v5143_v37, 4  ;;  %v5148_v40 = vpop.f32.mrb[9].mxu1 }
 0x5d6   :  { %v2454_v16 = vrot.slane %v5145_v30, 4  ;;  %v5151_v18 = vpop.f32.mrb[5].mxu0  ;;  %v2448_v31 = vrot.slane %v5148_v40, 4 }
 0x5d7   :  { %v2460_v32 = vrot.slane %v5151_v18, 4  ;;  %v2443_v27 = vadd.f32 %v2442_v38, %v5143_v37 }
 0x5d8   :  { %v2455_v39 = vadd.f32 %v2454_v16, %v5145_v30  ;;  %v2449_v29 = vadd.f32 %v2448_v31, %v5148_v40 }
 0x5d9   :  { %v2461_v34 = vadd.f32 %v2460_v32, %v5151_v18  ;;  %v2444_v35 = vrot.slane %v2443_v27, 2 }
 0x5da   :  { %v2456_v42 = vrot.slane %v2455_v39, 2  ;;  %v2450_v43 = vrot.slane %v2449_v29, 2 }
 0x5db   :  { %v2462_v44 = vrot.slane %v2461_v34, 2  ;;  %v2445_v45 = vadd.f32 %v2444_v35, %v2443_v27 }
 0x5dc   :  { %v2457_v46 = vadd.f32 %v2456_v42, %v2455_v39  ;;  %v2451_v47 = vadd.f32 %v2450_v43, %v2449_v29 }
 0x5dd   :  { %v2463_v48 = vadd.f32 %v2462_v44, %v2461_v34  ;;  %v2446_v49 = vrot.slane %v2445_v45, 1 }
 0x5de   :  { %v2458_v50 = vrot.slane %v2457_v46, 1  ;;  %v2452_v33 = vrot.slane %v2451_v47, 1 }
 0x5df   :  { %v2464_v53 = vrot.slane %v2463_v48, 1  ;;  %v2447_v54 = vadd.f32 %v2446_v49, %v2445_v45 }
 0x5e0   :  { %v2459_v55 = vadd.f32 %v2458_v50, %v2457_v46  ;;  %v2453_v56 = vadd.f32 %v2452_v33, %v2451_v47 }
 0x5e1   :  { %v2465_v57 = vadd.f32 %v2464_v53, %v2463_v48  ;;  %v5159_v58 = vmul.f32 0.125, %v2447_v54 }
 0x5e2   :  { %v5161_v59 = vmul.f32 0.125, %v2459_v55  ;;  %v5163_v60 = vmul.f32 0.125, %v2453_v56  ;;  %v2430_v56 = vrot.slane %v5138_v63, 4 }
 0x5e3   :  { %v5165_v36 = vmul.f32 0.125, %v2465_v57  ;;  %v2488_v61 = vsub.f32 %v5143_v37, %v5159_v58  ;;  %v2436_v57 = vrot.slane %v5140_v6, 4 }
 0x5e4   :  { %v2490_v41 = vsub.f32 %v5145_v30, %v5161_v59  ;;  %v2489_v62 = vsub.f32 %v5148_v40, %v5163_v60 }
 0x5e5   :  { %v2491_v2 = vsub.f32 %v5151_v18, %v5165_v36  ;;  %v2496_v4 = vmul.f32 %v2488_v61, %v2488_v61  ;;  %v2431_v61 = vadd.f32 %v2430_v56, %v5138_v63 }
 0x5e6   :  { %v2498_v7 = vmul.f32 %v2490_v41, %v2490_v41  ;;  %v2497_v8 = vmul.f32 %v2489_v62, %v2489_v62  ;;  %v2437_v41 = vadd.f32 %v2436_v57, %v5140_v6 }
 0x5e7   :  { %v2499_v9 = vmul.f32 %v2491_v2, %v2491_v2  ;;  %v2514_v10 = vrot.slane %v2496_v4, 4  ;;  %v2432_v62 = vrot.slane %v2431_v61, 2 }
 0x5e8   :  { %v2526_v13 = vrot.slane %v2498_v7, 4  ;;  %v2520_v14 = vrot.slane %v2497_v8, 4  ;;  %v2438_v2 = vrot.slane %v2437_v41, 2 }
 0x5e9   :  { %v2532_v15 = vrot.slane %v2499_v9, 4  ;;  %v2515_v17 = vadd.f32 %v2514_v10, %v2496_v4  ;;  %v2433_v4 = vadd.f32 %v2432_v62, %v2431_v61 }
 0x5ea   :  { %v2527_v19 = vadd.f32 %v2526_v13, %v2498_v7  ;;  %v2521_v20 = vadd.f32 %v2520_v14, %v2497_v8  ;;  %v2439_v7 = vadd.f32 %v2438_v2, %v2437_v41 }
 0x5eb   :  { %v2533_v21 = vadd.f32 %v2532_v15, %v2499_v9  ;;  %v2516_v22 = vrot.slane %v2515_v17, 2  ;;  %v2434_v8 = vrot.slane %v2433_v4, 1 }
 0x5ec   :  { %v2528_v23 = vrot.slane %v2527_v19, 2  ;;  %v2522_v24 = vrot.slane %v2521_v20, 2  ;;  %v2440_v9 = vrot.slane %v2439_v7, 1 }
 0x5ed   :  { %v2534_v25 = vrot.slane %v2533_v21, 2  ;;  %v2517_v26 = vadd.f32 %v2516_v22, %v2515_v17  ;;  %v2435_v10 = vadd.f32 %v2434_v8, %v2433_v4 }
 0x5ee   :  { %v2529_v51 = vadd.f32 %v2528_v23, %v2527_v19  ;;  %v2523_v28 = vadd.f32 %v2522_v24, %v2521_v20  ;;  %v2441_v13 = vadd.f32 %v2440_v9, %v2439_v7 }
 0x5ef   :  { %v2535_v52 = vadd.f32 %v2534_v25, %v2533_v21  ;;  %v2518_v38 = vrot.slane %v2517_v26, 1  ;;  %v5191_v14 = vmul.f32 0.125, %v2435_v10 }
 0x5f0   :  { %v2530_v16 = vrot.slane %v2529_v51, 1  ;;  %v2524_v31 = vrot.slane %v2523_v28, 1  ;;  %v5193_v15 = vmul.f32 0.125, %v2441_v13 }
 0x5f1   :  { %v2536_v32 = vrot.slane %v2535_v52, 1  ;;  %v2519_v27 = vadd.f32 %v2518_v38, %v2517_v26  ;;  %v2486_v17 = vsub.f32 %v5138_v63, %v5191_v14 }
 0x5f2   :  { %v2531_v39 = vadd.f32 %v2530_v16, %v2529_v51  ;;  %v2525_v29 = vadd.f32 %v2524_v31, %v2523_v28  ;;  %v2487_v19 = vsub.f32 %v5140_v6, %v5193_v15 }
 0x5f3   :  { %v2537_v34 = vadd.f32 %v2536_v32, %v2535_v52  ;;  %v2552_v35 = vmul.f32 0.125, %v2519_v27  ;;  %v2494_v20 = vmul.f32 %v2486_v17, %v2486_v17 }
 0x5f4   :  { %v2554_v42 = vmul.f32 0.125, %v2531_v39  ;;  %v2553_v43 = vmul.f32 0.125, %v2525_v29  ;;  %v2495_v21 = vmul.f32 %v2487_v19, %v2487_v19 }
 0x5f5   :  { %v2555_v44 = vmul.f32 0.125, %v2537_v34  ;;  %v2561_v45 = vadd.f32 0.8, %v2552_v35  ;;  %v2502_v22 = vrot.slane %v2494_v20, 4 }
 0x5f6   :  { %v2563_v46 = vadd.f32 0.8, %v2554_v42  ;;  %v2562_v47 = vadd.f32 0.8, %v2553_v43  ;;  %v2508_v23 = vrot.slane %v2495_v21, 4 }
 0x5f7   :  { %v2564_v48 = vadd.f32 0.8, %v2555_v44  ;;  %4618 = vrsqrt.f32 %v2561_v45  ;;  %v2503_v25 = vadd.f32 %v2502_v22, %v2494_v20 }
 0x5f8   :  { %4620 = vrsqrt.f32 %v2562_v47  ;;  %v2509_v28 = vadd.f32 %v2508_v23, %v2495_v21 }
 0x5f9   :  { %4622 = vrsqrt.f32 %v2563_v46  ;;  %v2504_v31 = vrot.slane %v2503_v25, 2 }
 0x5fa   :  { %4624 = vrsqrt.f32 %v2564_v48  ;;  %v2510_v27 = vrot.slane %v2509_v28, 2 }
 0x5fb   :  { %v2505_v35 = vadd.f32 %v2504_v31, %v2503_v25 }
 0x5fc   :  { %v2511_v43 = vadd.f32 %v2510_v27, %v2509_v28 }
 0x5fd   :  { %v2506_v47 = vrot.slane %v2505_v35, 1 }
 0x5fe   :  { %v2512_v56 = vrot.slane %v2511_v43, 1 }
 0x5ff   :  { %v2507_v62 = vadd.f32 %v2506_v47, %v2505_v35 }
 0x600   :  { %v2513_v4 = vadd.f32 %v2512_v56, %v2511_v43 }
 0x601   :  { %v5175_v49 = vpop.eup %4618  ;;  %v2550_v10 = vmul.f32 0.125, %v2507_v62 }
 0x602   :  { %v5177_v50 = vpop.eup %4620  ;;  %v2551_v17 = vmul.f32 0.125, %v2513_v4  ;;  %v2658_v4 = vsub.s32 5, %v5042_v3 }
 0x603   :  { %v5179_v33 = vpop.eup %4622  ;;  %v2584_v53 = vcombine.low %v5175_v49, %v5177_v50  ;;  %v2559_v22 = vadd.f32 0.8, %v2550_v10  ;;  %v2558_v49 = vld [vmem:[%s5311_s10] sm:$0xff] }
 0x604   :  { %v5183_v54 = vpop.eup %4624  ;;  %v2560_v25 = vadd.f32 0.8, %v2551_v17 }
 0x605   :  { %v2585_v55 = vcombine.low %v5179_v33, %v5183_v54  ;;  %4626 = vrsqrt.f32 %v2559_v22  ;;  %v2600_v43 = vrot.slane %v2584_v53, %v5045_v5  ;;  %v2654_v53 = vsub.s32 4, %v5042_v3 }
 0x606   :  { %4628 = vrsqrt.f32 %v2560_v25  ;;  %v2666_v33 = vsub.s32 7, %v5042_v3 }
 0x607   :  { %v2607_v56 = vrot.slane %v2585_v55, %v5045_v5 }
 0x654   :  { %v5199_v24 = vpop.f32.mrb[10].mxu1 }
 0x655   :  { %v2466_v26 = vrot.slane %v5199_v24, 4  ;;  %v5202_v51 = vpop.f32.mrb[11].mxu1 }
 0x656   :  { %v2472_v52 = vrot.slane %v5202_v51, 4 }
 0x657   :  { %v2467_v38 = vadd.f32 %v2466_v26, %v5199_v24 }
 0x658   :  { %v2473_v16 = vadd.f32 %v2472_v52, %v5202_v51 }
 0x659   :  { %v2468_v32 = vrot.slane %v2467_v38, 2 }
 0x65a   :  { %v2474_v39 = vrot.slane %v2473_v16, 2 }
 0x65b   :  { %v2469_v29 = vadd.f32 %v2468_v32, %v2467_v38 }
 0x65c   :  { %v2475_v34 = vadd.f32 %v2474_v39, %v2473_v16 }
 0x65d   :  { %v2470_v42 = vrot.slane %v2469_v29, 1 }
 0x65e   :  { %v2476_v44 = vrot.slane %v2475_v34, 1 }
 0x65f   :  { %v2471_v45 = vadd.f32 %v2470_v42, %v2469_v29  ;;  %v4627_v29 = vpop.eup %4626 }
 0x660   :  { %v2477_v46 = vadd.f32 %v2476_v44, %v2475_v34  ;;  %v4629_v34 = vpop.eup %4628 }
 0x661   :  { %v5207_v48 = vmul.f32 0.125, %v2471_v45  ;;  %v2583_v35 = vcombine.low %v4627_v29, %v4629_v34 }
 0x662   :  { %v5209_v57 = vmul.f32 0.125, %v2477_v46 }
 0x663   :  { %v2492_v61 = vsub.f32 %v5199_v24, %v5207_v48  ;;  %v2593_v45 = vrot.slane %v2583_v35, %v5045_v5  ;;  %v2634_v35 = vld [vmem:[#allocation14] sm:$0xff] }
 0x664   :  { %v2493_v41 = vsub.f32 %v5202_v51, %v5209_v57 }
 0x665   :  { %v2500_v2 = vmul.f32 %v2492_v61, %v2492_v61  ;;  %v2615_v47 = vcombine.low %v2593_v45, %v2600_v43 }
 0x666   :  { %v2501_v7 = vmul.f32 %v2493_v41, %v2493_v41 }
 0x667   :  { %v2538_v8 = vrot.slane %v2500_v2, 4  ;;  %v2623_v62 = vrot.slane %v2615_v47, %v5045_v5 }
 0x668   :  { %v2544_v9 = vrot.slane %v2501_v7, 4 }
 0x669   :  { %v2539_v13 = vadd.f32 %v2538_v8, %v2500_v2 }
 0x66a   :  { %v2545_v19 = vadd.f32 %v2544_v9, %v2501_v7  ;;  %v2662_v7 = vsub.s32 6, %v5042_v3 }
 0x66b   :  { %v2540_v20 = vrot.slane %v2539_v13, 2 }
 0x66c   :  { %v2546_v21 = vrot.slane %v2545_v19, 2 }
 0x66d   :  { %v2541_v23 = vadd.f32 %v2540_v20, %v2539_v13 }
 0x66e   :  { %v2547_v26 = vadd.f32 %v2546_v21, %v2545_v19 }
 0x66f   :  { %v2542_v28 = vrot.slane %v2541_v23, 1 }
 0x670   :  { %v2548_v52 = vrot.slane %v2547_v26, 1 }
 0x671   :  { %v2543_v38 = vadd.f32 %v2542_v28, %v2541_v23 }
 0x672   :  { %v2549_v16 = vadd.f32 %v2548_v52, %v2547_v26 }
 0x673   :  { %v2556_v31 = vmul.f32 0.125, %v2543_v38 }
 0x674   :  { %v2557_v32 = vmul.f32 0.125, %v2549_v16 }
 0x675   :  { %v2565_v27 = vadd.f32 0.8, %v2556_v31 }
 0x676   :  { %v2566_v39 = vadd.f32 0.8, %v2557_v32 }
 0x677   :  { %4630 = vrsqrt.f32 %v2565_v27 }
 0x678   :  { %4632 = vrsqrt.f32 %v2566_v39 }
 0x681   :  { %v4631_v42 = vpop.eup %4630 }
 0x682   :  { %v4633_v44 = vpop.eup %4632 }
 0x683   :  { %v2586_v46 = vcombine.low %v4631_v42, %v4633_v44 }
 0x685   :  { %v2614_v61 = vrot.slane %v2586_v46, %v5045_v5 }
 0x687   :  { %v2616_v41 = vcombine.low %v2607_v56, %v2614_v61 }
 0x689   :  { %v2630_v2 = vrot.slane %v2616_v41, %v5045_v5 }
 0x68b   :  { %v2631_v50 = vcombine.low %v2623_v62, %v2630_v2 }
 0x68d   :  { %v2633_v54 = vmul.f32 %v2631_v50, %v2558_v49 }
 0x68f   :  { %v2639_v55 = vrot.slane %v2633_v54, %v5053_v11  ;;  %v2643_v8 = vrot.slane %v2633_v54, %v5056_v12  ;;  %v2647_v9 = vrot.slane %v2633_v54, %v5095_v0  ;;  %v2651_v10 = vrot.slane %v2633_v54, %v5098_v1 }
 0x690   :  { %v2655_v13 = vrot.slane %v2633_v54, %v2654_v53  ;;  %v2659_v17 = vrot.slane %v2633_v54, %v2658_v4  ;;  %v2663_v19 = vrot.slane %v2633_v54, %v2662_v7  ;;  %v2667_v20 = vrot.slane %v2633_v54, %v2666_v33 }
 0x691   :  { %v2676_v21 = vmul.f32 %v2639_v55, %v5191_v14  ;;  %v2677_v22 = vmul.f32 %v2643_v8, %v5193_v15  ;;  %v2678_v23 = vmul.f32 %v2647_v9, %v5159_v58  ;;  %v2679_v3 = vmul.f32 %v2651_v10, %v5163_v60 }
 0x692   :  { %v2680_v25 = vmul.f32 %v2655_v13, %v5161_v59  ;;  %v2681_v26 = vmul.f32 %v2659_v17, %v5165_v36  ;;  %v2682_v28 = vmul.f32 %v2663_v19, %v5207_v48  ;;  %v2683_v52 = vmul.f32 %v2667_v20, %v5209_v57 }
 0x693   :  { %v2692_v38 = vcombine.low %v2676_v21, %v2677_v22  ;;  %v2693_v16 = vcombine.low %v2678_v23, %v2679_v3  ;;  %v2745_v14 = vmul.f32 %v2647_v9, %v5143_v37  ;;  %v2746_v15 = vmul.f32 %v2651_v10, %v5148_v40 }
 0x694   :  { %v2694_v31 = vcombine.low %v2680_v25, %v2681_v26  ;;  %v2695_v32 = vcombine.low %v2682_v28, %v2683_v52  ;;  %v2747_v59 = vmul.f32 %v2655_v13, %v5145_v30  ;;  %v2748_v36 = vmul.f32 %v2659_v17, %v5151_v18 }
 0x695   :  { %v2702_v58 = vrot.slane %v2692_v38, %v5045_v5  ;;  %v2709_v60 = vrot.slane %v2693_v16, %v5045_v5  ;;  %v2749_v27 = vmul.f32 %v2663_v19, %v5199_v24  ;;  %v2750_v39 = vmul.f32 %v2667_v20, %v5202_v51 }
 0x696   :  { %v2716_v48 = vrot.slane %v2694_v31, %v5045_v5  ;;  %v2723_v57 = vrot.slane %v2695_v32, %v5045_v5  ;;  %v2743_v30 = vmul.f32 %v2639_v55, %v5138_v63  ;;  %v2744_v18 = vmul.f32 %v2643_v8, %v5140_v6 }
 0x697   :  { %v2724_v29 = vcombine.low %v2702_v58, %v2709_v60 }
 0x698   :  { %v2725_v37 = vcombine.low %v2716_v48, %v2723_v57 }
 0x699   :  { %v2732_v40 = vrot.slane %v2724_v29, %v5045_v5 }
 0x69a   :  { %v2739_v34 = vrot.slane %v2725_v37, %v5045_v5 }
 0x69c   :  { %v2740_v42 = vcombine.low %v2732_v40, %v2739_v34 }
 0x69e   :  { %v2742_v43 = vsub.f32 %v2634_v35, %v2740_v42 }
 0x6a0   :  { %v2755_v44 = vrot.slane %v2742_v43, %v5053_v11  ;;  %v2759_v45 = vrot.slane %v2742_v43, %v5056_v12  ;;  %v2763_v24 = vrot.slane %v2742_v43, %v5095_v0  ;;  %v2767_v51 = vrot.slane %v2742_v43, %v5098_v1 }
 0x6a1   :  { %v2771_v46 = vrot.slane %v2742_v43, %v2654_v53  ;;  %v2775_v47 = vrot.slane %v2742_v43, %v2658_v4  ;;  %v2779_v56 = vrot.slane %v2742_v43, %v2662_v7  ;;  %v2783_v61 = vrot.slane %v2742_v43, %v2666_v33 }
 0x6a2   :  { %v2792_v5 = vadd.f32 %v2755_v44, %v2743_v30  ;;  %v2793_v41 = vadd.f32 %v2759_v45, %v2744_v18  ;;  %v2794_v62 = vadd.f32 %v2763_v24, %v2745_v14  ;;  %v2795_v2 = vadd.f32 %v2767_v51, %v2746_v15 }
 0x6a3   :  { %v2796_v49 = vadd.f32 %v2771_v46, %v2747_v59  ;;  %v2797_v63 = vadd.f32 %v2775_v47, %v2748_v36  ;;  %v2798_v50 = vadd.f32 %v2779_v56, %v2749_v27  ;;  %v2799_v6 = vadd.f32 %v2783_v61, %v2750_v39 }
 0x6a4   :  { %vm2800_vm9 = vcmp.gt.f32.partialorder %v2792_v5, 0.0  ;;  %vm2801_vm10 = vcmp.gt.f32.partialorder %v2793_v41, 0.0  ;;  %vm2802_vm11 = vcmp.gt.f32.partialorder %v2794_v62, 0.0  ;;  %vm2803_vm12 = vcmp.gt.f32.partialorder %v2795_v2, 0.0 }
 0x6a5   :  { %vm2804_vm13 = vcmp.gt.f32.partialorder %v2796_v49, 0.0  ;;  %vm2805_vm14 = vcmp.gt.f32.partialorder %v2797_v63, 0.0  ;;  %vm2806_vm15 = vcmp.gt.f32.partialorder %v2798_v50, 0.0  ;;  %vm2807_vm0 = vcmp.gt.f32.partialorder %v2799_v6, 0.0 }
 0x6a6   :  { %v2808_v0 = vmul.f32 0.2, %v2792_v5  ;;  %v2809_v1 = vmul.f32 0.2, %v2793_v41  ;;  %v2810_v53 = vmul.f32 0.2, %v2794_v62 }
 0x6a7   :  { %v2811_v4 = vmul.f32 0.2, %v2795_v2  ;;  %v2812_v7 = vmul.f32 0.2, %v2796_v49  ;;  %v2813_v33 = vmul.f32 0.2, %v2797_v63 }
 0x6a8   :  { %v2814_v54 = vmul.f32 0.2, %v2798_v50  ;;  %v2815_v55 = vmul.f32 0.2, %v2799_v6  ;;  %v5265_v8 = vsel %vm2800_vm9, %v2792_v5, %v2808_v0  ;;  %v2817_v9 = vsel %vm2801_vm10, %v2793_v41, %v2809_v1 }
 0x6a9   :  { %v5269_v10 = vsel %vm2802_vm11, %v2794_v62, %v2810_v53  ;;  %v5272_v13 = vsel %vm2803_vm12, %v2795_v2, %v2811_v4  ;;  %v5275_v17 = vsel %vm2804_vm13, %v2796_v49, %v2812_v7  ;;  %v5278_v19 = vsel %vm2805_vm14, %v2797_v63, %v2813_v33 }
 0x6aa   :  { %v5281_v20 = vsel %vm2806_vm15, %v2798_v50, %v2814_v54  ;;  %v5284_v21 = vsel %vm2807_vm0, %v2799_v6, %v2815_v55 }
 0x6ab   :  { %4808 = dma.done.wait [#allocation5 + $0x2], 16384 }
 0x6ac   :  { %4809 = vsyncadd [#allocation5 + $0x2], 4294950912  ;;  %3288 = vmatprep.mubr.f32.mxu0 %v2817_v9  ;;  %v2829_v22 = vld [vmem:[#allocation4 + $0x8] sm:$0xff]  ;;  %v2828_v23 = vld [vmem:[#allocation4] sm:$0xff] }
 0x6ad   :  { %v2831_v3 = vld [vmem:[#allocation4 + $0x18] sm:$0xff]  ;;  %4267 = vmatprep.subr.bf16.mxu0 %v2829_v22  ;;  %v2830_v25 = vld [vmem:[#allocation4 + $0x10] sm:$0xff]  ;;  %v2833_v26 = vld [vmem:[#allocation4 + $0x28] sm:$0xff] }
 0x6ae   :  { %4269 = vmatpush1.bf16.msra.mxu0 %v2828_v23  ;;  %v2832_v28 = vld [vmem:[#allocation4 + $0x20] sm:$0xff]  ;;  %v2835_v52 = vld [vmem:[#allocation4 + $0x38] sm:$0xff]  ;;  %v2834_v38 = vld [vmem:[#allocation4 + $0x30] sm:$0xff] }
 0x6af   :  { %4271 = vmatprep.subr.bf16.mxu0 %v2831_v3  ;;  %v2837_v16 = vld [vmem:[#allocation4 + $0x48] sm:$0xff]  ;;  %v2836_v31 = vld [vmem:[#allocation4 + $0x40] sm:$0xff]  ;;  %v2839_v32 = vld [vmem:[#allocation4 + $0x58] sm:$0xff] }
 0x6b0   :  { %v2838_v14 = vld [vmem:[#allocation4 + $0x50] sm:$0xff]  ;;  %v2841_v15 = vld [vmem:[#allocation4 + $0x68] sm:$0xff]  ;;  %v2840_v58 = vld [vmem:[#allocation4 + $0x60] sm:$0xff] }
 0x6b1   :  { %v2843_v60 = vld [vmem:[#allocation4 + $0x78] sm:$0xff]  ;;  %v2842_v59 = vld [vmem:[#allocation4 + $0x70] sm:$0xff]  ;;  %v2845_v36 = vld [vmem:[#allocation4 + $0x88] sm:$0xff] }
 0x6b2   :  { %4273 = vmatpush1.bf16.msra.mxu0 %v2830_v25  ;;  %v2844_v48 = vld [vmem:[#allocation4 + $0x80] sm:$0xff]  ;;  %v2847_v57 = vld [vmem:[#allocation4 + $0x98] sm:$0xff]  ;;  %v2846_v27 = vld [vmem:[#allocation4 + $0x90] sm:$0xff] }
 0x6b3   :  { %4275 = vmatprep.subr.bf16.mxu0 %v2833_v26  ;;  %v2849_v39 = vld [vmem:[#allocation4 + $0xa8] sm:$0xff]  ;;  %v2848_v29 = vld [vmem:[#allocation4 + $0xa0] sm:$0xff]  ;;  %v2851_v37 = vld [vmem:[#allocation4 + $0xb8] sm:$0xff] }
 0x6b4   :  { %v2850_v40 = vld [vmem:[#allocation4 + $0xb0] sm:$0xff]  ;;  %v2853_v34 = vld [vmem:[#allocation4 + $0xc8] sm:$0xff]  ;;  %v2852_v35 = vld [vmem:[#allocation4 + $0xc0] sm:$0xff] }
 0x6b5   :  { %v2855_v42 = vld [vmem:[#allocation4 + $0xd8] sm:$0xff]  ;;  %v2854_v43 = vld [vmem:[#allocation4 + $0xd0] sm:$0xff]  ;;  %v2857_v30 = vld [vmem:[#allocation4 + $0xe8] sm:$0xff] }
 0x6b6   :  { %4277 = vmatpush1.bf16.msra.mxu0 %v2832_v28  ;;  %v2856_v18 = vld [vmem:[#allocation4 + $0xe0] sm:$0xff]  ;;  %v2859_v44 = vld [vmem:[#allocation4 + $0xf8] sm:$0xff]  ;;  %v2858_v45 = vld [vmem:[#allocation4 + $0xf0] sm:$0xff] }
 0x6b7   :  { %4279 = vmatprep.subr.bf16.mxu0 %v2835_v52  ;;  %v2861_v24 = vld [vmem:[#allocation4 + $0x108] sm:$0xff]  ;;  %v2860_v51 = vld [vmem:[#allocation4 + $0x100] sm:$0xff]  ;;  %v2863_v46 = vld [vmem:[#allocation4 + $0x118] sm:$0xff] }
 0x6b8   :  { %v2862_v47 = vld [vmem:[#allocation4 + $0x110] sm:$0xff]  ;;  %v2865_v56 = vld [vmem:[#allocation4 + $0x128] sm:$0xff]  ;;  %v2864_v61 = vld [vmem:[#allocation4 + $0x120] sm:$0xff] }
 0x6b9   :  { %v2867_v5 = vld [vmem:[#allocation4 + $0x138] sm:$0xff]  ;;  %v2866_v41 = vld [vmem:[#allocation4 + $0x130] sm:$0xff]  ;;  %v2869_v62 = vld [vmem:[#allocation4 + $0x148] sm:$0xff] }
 0x6ba   :  { %4281 = vmatpush1.bf16.msra.mxu0 %v2834_v38  ;;  %v2868_v2 = vld [vmem:[#allocation4 + $0x140] sm:$0xff]  ;;  %v2871_v49 = vld [vmem:[#allocation4 + $0x158] sm:$0xff]  ;;  %v2870_v63 = vld [vmem:[#allocation4 + $0x150] sm:$0xff] }
 0x6bb   :  { %4283 = vmatprep.subr.bf16.mxu0 %v2837_v16  ;;  %v2873_v50 = vld [vmem:[#allocation4 + $0x168] sm:$0xff]  ;;  %v2872_v6 = vld [vmem:[#allocation4 + $0x160] sm:$0xff]  ;;  %v2875_v0 = vld [vmem:[#allocation4 + $0x178] sm:$0xff] }
 0x6bc   :  { %v2874_v1 = vld [vmem:[#allocation4 + $0x170] sm:$0xff]  ;;  %v2877_v53 = vld [vmem:[#allocation4 + $0x188] sm:$0xff]  ;;  %v2876_v4 = vld [vmem:[#allocation4 + $0x180] sm:$0xff] }
 0x6bd   :  { %v2879_v7 = vld [vmem:[#allocation4 + $0x198] sm:$0xff]  ;;  %v2878_v33 = vld [vmem:[#allocation4 + $0x190] sm:$0xff]  ;;  %v2881_v54 = vld [vmem:[#allocation4 + $0x1a8] sm:$0xff] }
 0x6be   :  { %4285 = vmatpush1.bf16.msra.mxu0 %v2836_v31  ;;  %v2880_v55 = vld [vmem:[#allocation4 + $0x1a0] sm:$0xff]  ;;  %v2882_v9 = vld [vmem:[#allocation4 + $0x1b0] sm:$0xff]  ;;  %v2887_v23 = vld [vmem:[#allocation4 + $0x1d8] sm:$0xff] }
 0x6bf   :  { %4287 = vmatprep.subr.bf16.mxu0 %v2839_v32  ;;  %v2884_v22 = vld [vmem:[#allocation4 + $0x1c0] sm:$0xff]  ;;  %v2886_v3 = vld [vmem:[#allocation4 + $0x1d0] sm:$0xff]  ;;  %v2889_v25 = vld [vmem:[#allocation4 + $0x1e8] sm:$0xff] }
 0x6c0   :  { %v2888_v26 = vld [vmem:[#allocation4 + $0x1e0] sm:$0xff]  ;;  %v2891_v28 = vld [vmem:[#allocation4 + $0x1f8] sm:$0xff]  ;;  %v2890_v52 = vld [vmem:[#allocation4 + $0x1f0] sm:$0xff] }
 0x6c1   :  { %v2893_v38 = vld [vmem:[#allocation4 + $0x208] sm:$0xff]  ;;  %v2892_v16 = vld [vmem:[#allocation4 + $0x200] sm:$0xff]  ;;  %v2895_v31 = vld [vmem:[#allocation4 + $0x218] sm:$0xff] }
 0x6c2   :  { %4289 = vmatpush1.bf16.msra.mxu0 %v2838_v14  ;;  %v2894_v32 = vld [vmem:[#allocation4 + $0x210] sm:$0xff]  ;;  %v2897_v14 = vld [vmem:[#allocation4 + $0x228] sm:$0xff] }
 0x6c3   :  { %4291 = vmatprep.subr.bf16.mxu0 %v2841_v15  ;;  %v2896_v15 = vld [vmem:[#allocation4 + $0x220] sm:$0xff] }
 0x6c6   :  { %4293 = vmatpush1.bf16.msra.mxu0 %v2840_v58  ;;  %v2899_v58 = vld [vmem:[#allocation4 + $0x238] sm:$0xff] }
 0x6c7   :  { %4295 = vmatprep.subr.bf16.mxu0 %v2843_v60  ;;  %v2898_v60 = vld [vmem:[#allocation4 + $0x230] sm:$0xff] }
 0x6ca   :  { %4297 = vmatpush1.bf16.msra.mxu0 %v2842_v59  ;;  %v2901_v59 = vld [vmem:[#allocation4 + $0x248] sm:$0xff] }
 0x6cb   :  { %4299 = vmatprep.subr.bf16.mxu0 %v2845_v36  ;;  %v2900_v36 = vld [vmem:[#allocation4 + $0x240] sm:$0xff] }
 0x6ce   :  { %4301 = vmatpush1.bf16.msra.mxu0 %v2844_v48  ;;  %v2903_v48 = vld [vmem:[#allocation4 + $0x258] sm:$0xff] }
 0x6cf   :  { %4303 = vmatprep.subr.bf16.mxu0 %v2847_v57  ;;  %v2905_v57 = vld [vmem:[#allocation4 + $0x268] sm:$0xff] }
 0x6d2   :  { %4305 = vmatpush1.bf16.msra.mxu0 %v2846_v27  ;;  %v2907_v27 = vld [vmem:[#allocation4 + $0x278] sm:$0xff] }
 0x6d3   :  { %4307 = vmatprep.subr.bf16.mxu0 %v2849_v39  ;;  %v2906_v39 = vld [vmem:[#allocation4 + $0x270] sm:$0xff] }
 0x6d6   :  { %4309 = vmatpush1.bf16.msra.mxu0 %v2848_v29  ;;  %v2909_v29 = vld [vmem:[#allocation4 + $0x288] sm:$0xff] }
 0x6d7   :  { %4311 = vmatprep.subr.bf16.mxu0 %v2851_v37  ;;  %v2908_v37 = vld [vmem:[#allocation4 + $0x280] sm:$0xff] }
 0x6da   :  { %4313 = vmatpush1.bf16.msra.mxu0 %v2850_v40  ;;  %v2911_v40 = vld [vmem:[#allocation4 + $0x298] sm:$0xff] }
 0x6db   :  { %4315 = vmatprep.subr.bf16.mxu0 %v2853_v34  ;;  %v2910_v34 = vld [vmem:[#allocation4 + $0x290] sm:$0xff] }
 0x6de   :  { %4317 = vmatpush1.bf16.msra.mxu0 %v2852_v35  ;;  %v2913_v35 = vld [vmem:[#allocation4 + $0x2a8] sm:$0xff] }
 0x6df   :  { %4319 = vmatprep.subr.bf16.mxu0 %v2855_v42  ;;  %v2912_v42 = vld [vmem:[#allocation4 + $0x2a0] sm:$0xff] }
 0x6e2   :  { %4321 = vmatpush1.bf16.msra.mxu0 %v2854_v43  ;;  %v2915_v43 = vld [vmem:[#allocation4 + $0x2b8] sm:$0xff] }
 0x6e3   :  { %4323 = vmatprep.subr.bf16.mxu0 %v2857_v30  ;;  %v2914_v30 = vld [vmem:[#allocation4 + $0x2b0] sm:$0xff] }
 0x6e6   :  { %4325 = vmatpush1.bf16.msra.mxu0 %v2856_v18  ;;  %v2917_v18 = vld [vmem:[#allocation4 + $0x2c8] sm:$0xff] }
 0x6e7   :  { %4327 = vmatprep.subr.bf16.mxu0 %v2859_v44  ;;  %v2916_v44 = vld [vmem:[#allocation4 + $0x2c0] sm:$0xff] }
 0x6ea   :  { %4329 = vmatpush1.bf16.msra.mxu0 %v2858_v45  ;;  %v2919_v45 = vld [vmem:[#allocation4 + $0x2d8] sm:$0xff] }
 0x6eb   :  { %4331 = vmatprep.subr.bf16.mxu0 %v2861_v24  ;;  %v2918_v24 = vld [vmem:[#allocation4 + $0x2d0] sm:$0xff] }
 0x6ed   :  { %3289 = vmatmul.mubr.f32.vlgmr.msra.gmra.mrb[6].mxu0 %v5265_v8  ;;  %v2883_v8 = vld [vmem:[#allocation4 + $0x1b8] sm:$0xff] }
 0x6ee   :  { %4333 = vmatpush1.bf16.msra.mxu0 %v2860_v51  ;;  %3359 = vmatprep.mubr.f32.mxu0 %v5272_v13  ;;  %v2885_v13 = vld [vmem:[#allocation4 + $0x1c8] sm:$0xff] }
 0x6ef   :  { %4335 = vmatprep.subr.bf16.mxu0 %v2863_v46  ;;  %v2921_v51 = vld [vmem:[#allocation4 + $0x2e8] sm:$0xff]  ;;  %v2920_v46 = vld [vmem:[#allocation4 + $0x2e0] sm:$0xff] }
 0x6f2   :  { %4337 = vmatpush1.bf16.msra.mxu0 %v2862_v47  ;;  %v2923_v47 = vld [vmem:[#allocation4 + $0x2f8] sm:$0xff] }
 0x6f3   :  { %4339 = vmatprep.subr.bf16.mxu0 %v2865_v56  ;;  %v2922_v56 = vld [vmem:[#allocation4 + $0x2f0] sm:$0xff] }
 0x6f6   :  { %4341 = vmatpush1.bf16.msra.mxu0 %v2864_v61  ;;  %v2925_v61 = vld [vmem:[#allocation4 + $0x308] sm:$0xff] }
 0x6f7   :  { %4343 = vmatprep.subr.bf16.mxu0 %v2867_v5  ;;  %v2924_v5 = vld [vmem:[#allocation4 + $0x300] sm:$0xff] }
 0x6fa   :  { %4345 = vmatpush1.bf16.msra.mxu0 %v2866_v41  ;;  %v2927_v41 = vld [vmem:[#allocation4 + $0x318] sm:$0xff] }
 0x6fb   :  { %4347 = vmatprep.subr.bf16.mxu0 %v2869_v62  ;;  %v2926_v62 = vld [vmem:[#allocation4 + $0x310] sm:$0xff] }
 0x6fe   :  { %4349 = vmatpush1.bf16.msra.mxu0 %v2868_v2  ;;  %v2929_v2 = vld [vmem:[#allocation4 + $0x328] sm:$0xff] }
 0x6ff   :  { %4351 = vmatprep.subr.bf16.mxu0 %v2871_v49  ;;  %v2928_v49 = vld [vmem:[#allocation4 + $0x320] sm:$0xff] }
 0x702   :  { %4353 = vmatpush1.bf16.msra.mxu0 %v2870_v63  ;;  %v2931_v63 = vld [vmem:[#allocation4 + $0x338] sm:$0xff] }
 0x703   :  { %4355 = vmatprep.subr.bf16.mxu0 %v2873_v50  ;;  %v2930_v50 = vld [vmem:[#allocation4 + $0x330] sm:$0xff] }
 0x706   :  { %4357 = vmatpush1.bf16.msra.mxu0 %v2872_v6  ;;  %v2933_v6 = vld [vmem:[#allocation4 + $0x348] sm:$0xff] }
 0x707   :  { %4359 = vmatprep.subr.bf16.mxu0 %v2875_v0  ;;  %v2932_v0 = vld [vmem:[#allocation4 + $0x340] sm:$0xff] }
 0x70a   :  { %4361 = vmatpush1.bf16.msra.mxu0 %v2874_v1  ;;  %v2935_v1 = vld [vmem:[#allocation4 + $0x358] sm:$0xff] }
 0x70b   :  { %4363 = vmatprep.subr.bf16.mxu0 %v2877_v53  ;;  %v2937_v53 = vld [vmem:[#allocation4 + $0x368] sm:$0xff] }
 0x70e   :  { %4365 = vmatpush1.bf16.msra.mxu0 %v2876_v4  ;;  %v2939_v4 = vld [vmem:[#allocation4 + $0x378] sm:$0xff] }
 0x70f   :  { %4367 = vmatprep.subr.bf16.mxu0 %v2879_v7  ;;  %v2938_v7 = vld [vmem:[#allocation4 + $0x370] sm:$0xff] }
 0x712   :  { %4369 = vmatpush1.bf16.msra.mxu0 %v2878_v33  ;;  %v2941_v33 = vld [vmem:[#allocation4 + $0x388] sm:$0xff] }
 0x713   :  { %4371 = vmatprep.subr.bf16.mxu0 %v2881_v54  ;;  %v2940_v54 = vld [vmem:[#allocation4 + $0x380] sm:$0xff] }
 0x716   :  { %4373 = vmatpush1.bf16.msra.mxu0 %v2880_v55  ;;  %v2943_v55 = vld [vmem:[#allocation4 + $0x398] sm:$0xff] }
 0x717   :  { %4375 = vmatprep.subr.bf16.mxu0 %v2883_v8  ;;  %v2942_v8 = vld [vmem:[#allocation4 + $0x390] sm:$0xff] }
 0x71a   :  { %4377 = vmatpush1.bf16.msra.mxu0 %v2882_v9  ;;  %v2945_v9 = vld [vmem:[#allocation4 + $0x3a8] sm:$0xff] }
 0x71b   :  { %4379 = vmatprep.subr.bf16.mxu0 %v2885_v13  ;;  %v2944_v13 = vld [vmem:[#allocation4 + $0x3a0] sm:$0xff] }
 0x71e   :  { %4381 = vmatpush1.bf16.msra.mxu0 %v2884_v22  ;;  %v2947_v22 = vld [vmem:[#allocation4 + $0x3b8] sm:$0xff] }
 0x71f   :  { %4383 = vmatprep.subr.bf16.mxu0 %v2887_v23  ;;  %v2946_v23 = vld [vmem:[#allocation4 + $0x3b0] sm:$0xff] }
 0x722   :  { %4385 = vmatpush1.bf16.msra.mxu0 %v2886_v3  ;;  %v2949_v3 = vld [vmem:[#allocation4 + $0x3c8] sm:$0xff] }
 0x723   :  { %4387 = vmatprep.subr.bf16.mxu0 %v2889_v25  ;;  %v2948_v25 = vld [vmem:[#allocation4 + $0x3c0] sm:$0xff] }
 0x726   :  { %4389 = vmatpush1.bf16.msra.mxu0 %v2888_v26  ;;  %v2951_v26 = vld [vmem:[#allocation4 + $0x3d8] sm:$0xff] }
 0x727   :  { %4391 = vmatprep.subr.bf16.mxu0 %v2891_v28  ;;  %v2950_v28 = vld [vmem:[#allocation4 + $0x3d0] sm:$0xff] }
 0x72a   :  { %4393 = vmatpush1.bf16.msra.mxu0 %v2890_v52  ;;  %v2953_v52 = vld [vmem:[#allocation4 + $0x3e8] sm:$0xff] }
 0x72b   :  { %4395 = vmatprep.subr.bf16.mxu0 %v2893_v38  ;;  %v2952_v38 = vld [vmem:[#allocation4 + $0x3e0] sm:$0xff] }
 0x72d   :  { %3360 = vmatmul.mubr.f32.vlgmr.msra.gmra.mrb[6].mxu0 %v5269_v10  ;;  %v2902_v10 = vld [vmem:[#allocation4 + $0x250] sm:$0xff] }
 0x72e   :  { %4397 = vmatpush1.bf16.msra.mxu0 %v2892_v16  ;;  %3430 = vmatprep.mubr.f32.mxu0 %v5278_v19  ;;  %v2904_v19 = vld [vmem:[#allocation4 + $0x260] sm:$0xff]  ;;  %v2955_v16 = vld [vmem:[#allocation4 + $0x3f8] sm:$0xff] }
 0x72f   :  { %4399 = vmatprep.subr.bf16.mxu0 %v2895_v31  ;;  %v2954_v31 = vld [vmem:[#allocation4 + $0x3f0] sm:$0xff] }
 0x732   :  { %4401 = vmatpush1.bf16.msra.mxu0 %v2894_v32  ;;  %v3212_v32 = vld [vmem:[#allocation16] sm:$0x3] }
 0x733   :  { %4403 = vmatprep.subr.bf16.mxu0 %v2897_v14  ;;  %v3217_v14 = vrot.slane %v3212_v32, %v5053_v11 }
 0x736   :  { %4405 = vmatpush1.bf16.msra.mxu0 %v2896_v15  ;;  %v3221_v15 = vrot.slane %v3212_v32, %v5056_v12 }
 0x737   :  { %4407 = vmatprep.subr.bf16.mxu0 %v2899_v58 }
 0x73a   :  { %4409 = vmatpush1.bf16.msra.mxu0 %v2898_v60 }
 0x73b   :  { %4411 = vmatprep.subr.bf16.mxu0 %v2901_v59 }
 0x73e   :  { %4413 = vmatpush1.bf16.msra.mxu0 %v2900_v36 }
 0x73f   :  { %4415 = vmatprep.subr.bf16.mxu0 %v2903_v48 }
 0x742   :  { %4417 = vmatpush1.bf16.msra.mxu0 %v2902_v10 }
 0x743   :  { %4419 = vmatprep.subr.bf16.mxu0 %v2905_v57 }
 0x746   :  { %4421 = vmatpush1.bf16.msra.mxu0 %v2904_v19 }
 0x747   :  { %4423 = vmatprep.subr.bf16.mxu0 %v2907_v27 }
 0x74a   :  { %4425 = vmatpush1.bf16.msra.mxu0 %v2906_v39 }
 0x74b   :  { %4427 = vmatprep.subr.bf16.mxu0 %v2909_v29 }
 0x74e   :  { %4429 = vmatpush1.bf16.msra.mxu0 %v2908_v37 }
 0x74f   :  { %4431 = vmatprep.subr.bf16.mxu0 %v2911_v40 }
 0x752   :  { %4433 = vmatpush1.bf16.msra.mxu0 %v2910_v34 }
 0x753   :  { %4435 = vmatprep.subr.bf16.mxu0 %v2913_v35 }
 0x756   :  { %4437 = vmatpush1.bf16.msra.mxu0 %v2912_v42 }
 0x757   :  { %4439 = vmatprep.subr.bf16.mxu0 %v2915_v43 }
 0x75a   :  { %4441 = vmatpush1.bf16.msra.mxu0 %v2914_v30 }
 0x75b   :  { %4443 = vmatprep.subr.bf16.mxu0 %v2917_v18 }
 0x75e   :  { %4445 = vmatpush1.bf16.msra.mxu0 %v2916_v44 }
 0x75f   :  { %4447 = vmatprep.subr.bf16.mxu0 %v2919_v45 }
 0x762   :  { %4449 = vmatpush1.bf16.msra.mxu0 %v2918_v24 }
 0x763   :  { %4451 = vmatprep.subr.bf16.mxu0 %v2921_v51 }
 0x766   :  { %4453 = vmatpush1.bf16.msra.mxu0 %v2920_v46 }
 0x767   :  { %4455 = vmatprep.subr.bf16.mxu0 %v2923_v47 }
 0x76a   :  { %4457 = vmatpush1.bf16.msra.mxu0 %v2922_v56 }
 0x76b   :  { %4459 = vmatprep.subr.bf16.mxu0 %v2925_v61 }
 0x76d   :  { %3431 = vmatmul.mubr.f32.vlgmr.msra.gmra.mrb[6].mxu0 %v5275_v17  ;;  %v2934_v17 = vld [vmem:[#allocation4 + $0x350] sm:$0xff] }
 0x76e   :  { %4461 = vmatpush1.bf16.msra.mxu0 %v2924_v5  ;;  %3501 = vmatprep.mubr.f32.mxu0 %v5284_v21  ;;  %v2936_v21 = vld [vmem:[#allocation4 + $0x360] sm:$0xff] }
 0x76f   :  { %4463 = vmatprep.subr.bf16.mxu0 %v2927_v41 }
 0x772   :  { %4465 = vmatpush1.bf16.msra.mxu0 %v2926_v62 }
 0x773   :  { %4467 = vmatprep.subr.bf16.mxu0 %v2929_v2 }
 0x776   :  { %4469 = vmatpush1.bf16.msra.mxu0 %v2928_v49 }
 0x777   :  { %4471 = vmatprep.subr.bf16.mxu0 %v2931_v63 }
 0x77a   :  { %4473 = vmatpush1.bf16.msra.mxu0 %v2930_v50 }
 0x77b   :  { %4475 = vmatprep.subr.bf16.mxu0 %v2933_v6 }
 0x77e   :  { %4477 = vmatpush1.bf16.msra.mxu0 %v2932_v0 }
 0x77f   :  { %4479 = vmatprep.subr.bf16.mxu0 %v2935_v1 }
 0x782   :  { %4481 = vmatpush1.bf16.msra.mxu0 %v2934_v17 }
 0x783   :  { %4483 = vmatprep.subr.bf16.mxu0 %v2937_v53 }
 0x786   :  { %4485 = vmatpush1.bf16.msra.mxu0 %v2936_v21 }
 0x787   :  { %4487 = vmatprep.subr.bf16.mxu0 %v2939_v4 }
 0x78a   :  { %4489 = vmatpush1.bf16.msra.mxu0 %v2938_v7 }
 0x78b   :  { %4491 = vmatprep.subr.bf16.mxu0 %v2941_v33 }
 0x78e   :  { %4493 = vmatpush1.bf16.msra.mxu0 %v2940_v54 }
 0x78f   :  { %4495 = vmatprep.subr.bf16.mxu0 %v2943_v55 }
 0x792   :  { %4497 = vmatpush1.bf16.msra.mxu0 %v2942_v8 }
 0x793   :  { %4499 = vmatprep.subr.bf16.mxu0 %v2945_v9 }
 0x796   :  { %4501 = vmatpush1.bf16.msra.mxu0 %v2944_v13 }
 0x797   :  { %4503 = vmatprep.subr.bf16.mxu0 %v2947_v22 }
 0x79a   :  { %4505 = vmatpush1.bf16.msra.mxu0 %v2946_v23 }
 0x79b   :  { %4507 = vmatprep.subr.bf16.mxu0 %v2949_v3 }
 0x79e   :  { %4509 = vmatpush1.bf16.msra.mxu0 %v2948_v25 }
 0x79f   :  { %4511 = vmatprep.subr.bf16.mxu0 %v2951_v26 }
 0x7a2   :  { %4513 = vmatpush1.bf16.msra.mxu0 %v2950_v28 }
 0x7a3   :  { %4515 = vmatprep.subr.bf16.mxu0 %v2953_v52 }
 0x7a6   :  { %4517 = vmatpush1.bf16.msra.mxu0 %v2952_v38 }
 0x7a7   :  { %4519 = vmatprep.subr.bf16.mxu0 %v2955_v16 }
 0x7aa   :  { %4521 = vmatpush1.bf16.msra.mxu0 %v2954_v31 }
 0x7ad   :  { %3502 = vmatmul.mubr.f32.vlgmr.msra.gmra.mrb[6].mxu0 %v5281_v20 }
 0x880   :  { %v3503_v58 = vpop.f32.mrb[6].mxu0 }
 0x881   :  { %v4524_v60 = vadd.f32 %v3503_v58, %v3217_v14  ;;  %v3505_v59 = vpop.f32.mrb[7].mxu0 }
 0x882   :  { %v4525_v36 = vadd.f32 %v3505_v59, %v3221_v15 }
 0x883   :  { %v3558_v48 = vmul.f32 -1.442695, %v4524_v60 }
 0x884   :  { %v3559_v10 = vmul.f32 -1.442695, %v4525_v36 }
 0x885   :  { %4634 = vpow2.f32 %v3558_v48 }
 0x886   :  { %4636 = vpow2.f32 %v3559_v10 }
 0x88f   :  { %v4635_v57 = vpop.eup %4634 }
 0x890   :  { %v4637_v19 = vpop.eup %4636  ;;  %v3514_v27 = vadd.f32 1.0, %v4635_v57 }
 0x891   :  { %v3515_v39 = vadd.f32 1.0, %v4637_v19 }
 0x892   :  { %4638 = vrcp.f32 %v3514_v27 }
 0x893   :  { %4640 = vrcp.f32 %v3515_v39 }
 0x89c   :  { %v4639_v20 = vpop.eup %4638 }
 0x89d   :  { %v4641_v29 = vpop.eup %4640  ;;  %3520 = vst [vmem:[%s5315_s14] sm:$0xff] %v4639_v20 }
 0x89e   :  { %3521 = vst [vmem:[%s5315_s14 + $0x8] sm:$0xff] %v4641_v29 }
 0x89f   :  { %3526 = vsyncpa [#allocation7], 1 }
 0x8a0   :  { %3527 = vsyncpa [#allocation9], 1 }
 0x8a1   :  { %3528 = vsyncpa [#allocation12], 1 }
 0x8a2   :  { %3529 = vsyncpa [#allocation15], 1 }
 0x8a3   :  { %3530 = vsyncmov [#allocation5] }
 0x8a6   :  { %s3531_s19 = vpop.sfrf %3530 }
 0x8a7   :  { %p3560_p0 = scmp.ne.s32.totalorder %s3531_s19, 0 }
 0x8a9   :  { %3535 = shalt.err (%p3560_p0)  }
 0x8aa   :  { %3537 = vsyncmov [#allocation5 + $0x1] }
 0x8ad   :  { %s3538_s20 = vpop.sfrf %3537 }
 0x8ae   :  { %p3561_p1 = scmp.ne.s32.totalorder %s3538_s20, 0 }
 0x8b0   :  { %3542 = shalt.err (%p3561_p1)  }
 0x8b1   :  { %3544 = vsyncmov [#allocation5 + $0x2] }
 0x8b4   :  { %s3545_s21 = vpop.sfrf %3544 }
 0x8b5   :  { %p3562_p2 = scmp.ne.s32.totalorder %s3545_s21, 0 }
 0x8b7   :  { %3549 = shalt.err (%p3562_p2)  }

</bundles_post_ra>
